<compile_context>
chip_gen: v7x
topology: tpu7x:2x2x1
jax: 0.10.0
libtpu: 0.0.40
codegen_flags: <defaults>
</compile_context>

<pallas_src>
import jax
import jax.numpy as jnp
from jax.experimental import pallas as pl
from jax.experimental.pallas import tpu as pltpu

N_INPUT = 1
N_HIDDEN = 64
N_OUTPUT = 2

TILE_COLS = 512  # batch rows per grid step (multiple of 128; lane-dense tiles)


def _mlp_kernel(x_ref,
                w1_ref, b1_ref,
                w2_ref, b2_ref,
                w3_ref, b3_ref,
                w4_ref, b4_ref,
                w5_ref, b5_ref,
                o_ref):
    # Everything is feature-major: activations are (features, TILE) so the lane
    # axis (last dim) is the 512-wide batch tile.
    x = x_ref[...]                                          # (1, TILE) f32

    # Layer 1: K=1 contraction -> VPU broadcast outer product instead of an MXU
    # matmul (avoids padding the MXU contraction depth for a single feature).
    h = jnp.tanh(w1_ref[...] * x + b1_ref[...])             # (64,1)*(1,TILE)+(64,1)

    # Hidden 64x64 layers on the MXU, f32 accumulation; operand dtype follows the
    # weight dtype chosen in the wrapper (f32 default, bf16 optional on v6e/v7x).
    h = jnp.tanh(jnp.dot(w2_ref[...], h.astype(w2_ref.dtype),
                         preferred_element_type=jnp.float32) + b2_ref[...])
    h = jnp.tanh(jnp.dot(w3_ref[...], h.astype(w3_ref.dtype),
                         preferred_element_type=jnp.float32) + b3_ref[...])
    h = jnp.tanh(jnp.dot(w4_ref[...], h.astype(w4_ref.dtype),
                         preferred_element_type=jnp.float32) + b4_ref[...])

    logits = (jnp.dot(w5_ref[...], h.astype(w5_ref.dtype),
                      preferred_element_type=jnp.float32) + b5_ref[...])  # (2, TILE)
    o_ref[...] = jax.nn.sigmoid(logits).astype(o_ref.dtype)


def net_forward(x, params, *, tile_cols=TILE_COLS, mxu_dtype=jnp.float32):
    """x: (N, n_input) float32; params: list of (W, b) with W (in, out), b (1, out).

    mxu_dtype: dtype for the 64x64 / 64x2 matmul operands (jnp.bfloat16 is a good
    choice on v6e/v7x; keep jnp.float32 for exact-tolerance checks / v5e).
    """
    n, n_in = x.shape
    assert n_in == N_INPUT, "kernel specialises the n_input=1 first layer"

    n_pad = pl.cdiv(n, tile_cols) * tile_cols
    xt = x.astype(jnp.float32).T                  # (1, N) -- feature-major
    if n_pad != n:
        xt = jnp.pad(xt, ((0, 0), (0, n_pad - n)))
    num_tiles = n_pad // tile_cols

    # Transpose params into feature-major (out, in) weights and (out, 1) biases.
    # Layer-1 weight stays f32 (VPU path); matmul weights may be downcast for the
    # MXU; biases stay f32 (added post-accumulation).
    (w1, b1), rest = params[0], params[1:]
    flat = [w1.T.astype(jnp.float32), b1.reshape(-1, 1).astype(jnp.float32)]
    for w, b in rest:
        flat.extend([w.T.astype(mxu_dtype), b.reshape(-1, 1).astype(jnp.float32)])

    def resident_spec(arr):
        # Full-array block with a constant index map -> fetched once, stays in VMEM.
        return pl.BlockSpec(arr.shape, lambda i, nd=arr.ndim: (0,) * nd)

    in_specs = ([pl.BlockSpec((N_INPUT, tile_cols), lambda i: (0, i))]
                + [resident_spec(a) for a in flat])
    out_spec = pl.BlockSpec((N_OUTPUT, tile_cols), lambda i: (0, i))

    out_t = pl.pallas_call(
        _mlp_kernel,
        out_shape=jax.ShapeDtypeStruct((N_OUTPUT, n_pad), jnp.float32),
        grid_spec=pl.GridSpec(
            grid=(num_tiles,),
            in_specs=in_specs,
            out_specs=out_spec,
        ),
        compiler_params=pltpu.CompilerParams(
            dimension_semantics=("parallel",),   # shards batch tiles across TCs on v7x
            vmem_limit_bytes=32 * 1024 * 1024,   # ample headroom; within v5e/v7x physical
        ),
    )(xt, *flat)

    return out_t[:, :n].T                        # back to (N, n_output)


def init_params(key):
    """Deterministic xavier-normal weights (matching nn.init.xavier_normal_),
    zero biases (PyTorch Linear default bias init is uniform; biases are left
    at zero here for determinism of this synthetic kernel)."""
    dims = [(N_INPUT, N_HIDDEN), (N_HIDDEN, N_HIDDEN), (N_HIDDEN, N_HIDDEN),
            (N_HIDDEN, N_HIDDEN), (N_HIDDEN, N_OUTPUT)]
    params = []
    for (fan_in, fan_out) in dims:
        key, wk = jax.random.split(key)
        std = (2.0 / (fan_in + fan_out)) ** 0.5
        w = std * jax.random.normal(wk, (fan_in, fan_out), dtype=jnp.float32)
        b = jnp.zeros((1, fan_out), dtype=jnp.float32)
        params.append((w, b))
    return params


def reference_forward(x, params):
    h = x
    for i, (w, b) in enumerate(params):
        h = h @ w + b
        h = jax.nn.sigmoid(h) if i == len(params) - 1 else jnp.tanh(h)
    return h


if __name__ == "__main__":
    key = jax.random.PRNGKey(0)
    key, xkey = jax.random.split(key)

    # Small batch of time samples t (n_input=1 feature each); not a multiple of
    # TILE_COLS so the pad-to-tile / ragged-tail path is exercised.
    batch = 1000
    x = jax.random.normal(xkey, (batch, N_INPUT), dtype=jnp.float32)

    params = init_params(key)

    out = net_forward(x, params)          # f32 matmul operands -> exact check
    out = jax.block_until_ready(out)

    ref = reference_forward(x, params)
    assert out.shape == (batch, N_OUTPUT), out.shape
    assert jnp.allclose(out, ref, atol=1e-5, rtol=1e-5), (
        f"max abs err = {jnp.max(jnp.abs(out - ref))}")

    # TODO(synk): self.T parameter and loss_fn (finite-difference dx/dy + loss_cls)
    # are training-time glue, not part of forward(); not implemented as a kernel.
    print("KERNEL_OK")
</pallas_src>

<mosaic_0001>
module attributes {stable_mosaic.version = 11 : i64} {
  func.func @_mlp_kernel(%arg0: i32, %arg1: memref<1x512xf32, #tpu.memory_space<vmem>>, %arg2: memref<64x1xf32, #tpu.memory_space<vmem>>, %arg3: memref<64x1xf32, #tpu.memory_space<vmem>>, %arg4: memref<64x64xf32, #tpu.memory_space<vmem>>, %arg5: memref<64x1xf32, #tpu.memory_space<vmem>>, %arg6: memref<64x64xf32, #tpu.memory_space<vmem>>, %arg7: memref<64x1xf32, #tpu.memory_space<vmem>>, %arg8: memref<64x64xf32, #tpu.memory_space<vmem>>, %arg9: memref<64x1xf32, #tpu.memory_space<vmem>>, %arg10: memref<2x64xf32, #tpu.memory_space<vmem>>, %arg11: memref<2x1xf32, #tpu.memory_space<vmem>>, %arg12: memref<2x512xf32, #tpu.memory_space<vmem>>) attributes {dimension_semantics = [#tpu.dimension_semantics<parallel>], iteration_bounds = array<i64: 2>, scalar_prefetch = 0 : i64, scratch_operands = 0 : i64, tpu.core_type = #tpu.core_type<tc>, window_params = [{transform_indices = @transform_0, window_bounds = array<i64: 1, 512>}, {pipeline_mode = #tpu.pipeline_mode<synchronous>, transform_indices = @transform_1, window_bounds = array<i64: 64, 1>}, {pipeline_mode = #tpu.pipeline_mode<synchronous>, transform_indices = @transform_2, window_bounds = array<i64: 64, 1>}, {pipeline_mode = #tpu.pipeline_mode<synchronous>, transform_indices = @transform_3, window_bounds = array<i64: 64, 64>}, {pipeline_mode = #tpu.pipeline_mode<synchronous>, transform_indices = @transform_4, window_bounds = array<i64: 64, 1>}, {pipeline_mode = #tpu.pipeline_mode<synchronous>, transform_indices = @transform_5, window_bounds = array<i64: 64, 64>}, {pipeline_mode = #tpu.pipeline_mode<synchronous>, transform_indices = @transform_6, window_bounds = array<i64: 64, 1>}, {pipeline_mode = #tpu.pipeline_mode<synchronous>, transform_indices = @transform_7, window_bounds = array<i64: 64, 64>}, {pipeline_mode = #tpu.pipeline_mode<synchronous>, transform_indices = @transform_8, window_bounds = array<i64: 64, 1>}, {pipeline_mode = #tpu.pipeline_mode<synchronous>, transform_indices = @transform_9, window_bounds = array<i64: 2, 64>}, {pipeline_mode = #tpu.pipeline_mode<synchronous>, transform_indices = @transform_10, window_bounds = array<i64: 2, 1>}, {transform_indices = @transform_11, window_bounds = array<i64: 2, 512>}]} {
    %c0 = arith.constant 0 : index
    %c0_0 = arith.constant 0 : index
    %0 = vector.load %arg1[%c0, %c0_0] : memref<1x512xf32, #tpu.memory_space<vmem>>, vector<1x512xf32>
    %c0_1 = arith.constant 0 : index
    %c0_2 = arith.constant 0 : index
    %1 = vector.load %arg2[%c0_1, %c0_2] : memref<64x1xf32, #tpu.memory_space<vmem>>, vector<64x1xf32>
    %2 = vector.broadcast %1 : vector<64x1xf32> to vector<64x512xf32>
    %3 = vector.broadcast %0 : vector<1x512xf32> to vector<64x512xf32>
    %4 = arith.mulf %2, %3 : vector<64x512xf32>
    %c0_3 = arith.constant 0 : index
    %c0_4 = arith.constant 0 : index
    %5 = vector.load %arg3[%c0_3, %c0_4] : memref<64x1xf32, #tpu.memory_space<vmem>>, vector<64x1xf32>
    %6 = vector.broadcast %5 : vector<64x1xf32> to vector<64x512xf32>
    %7 = arith.addf %4, %6 : vector<64x512xf32>
    %8 = math.tanh %7 : vector<64x512xf32>
    %c0_5 = arith.constant 0 : index
    %c0_6 = arith.constant 0 : index
    %9 = vector.load %arg4[%c0_5, %c0_6] : memref<64x64xf32, #tpu.memory_space<vmem>>, vector<64x64xf32>
    %cst = arith.constant dense<0.000000e+00> : vector<64x512xf32>
    %10 = tpu.matmul %9, %8, %cst {dimension_numbers = #tpu.dot_dimension_numbers<[1], [0], [0], [1], [0, 0, 1, 1], [], []>} : vector<64x64xf32>, vector<64x512xf32>, vector<64x512xf32> -> vector<64x512xf32>
    %c0_7 = arith.constant 0 : index
    %c0_8 = arith.constant 0 : index
    %11 = vector.load %arg5[%c0_7, %c0_8] : memref<64x1xf32, #tpu.memory_space<vmem>>, vector<64x1xf32>
    %12 = vector.broadcast %11 : vector<64x1xf32> to vector<64x512xf32>
    %13 = arith.addf %10, %12 : vector<64x512xf32>
    %14 = math.tanh %13 : vector<64x512xf32>
    %c0_9 = arith.constant 0 : index
    %c0_10 = arith.constant 0 : index
    %15 = vector.load %arg6[%c0_9, %c0_10] : memref<64x64xf32, #tpu.memory_space<vmem>>, vector<64x64xf32>
    %cst_11 = arith.constant dense<0.000000e+00> : vector<64x512xf32>
    %16 = tpu.matmul %15, %14, %cst_11 {dimension_numbers = #tpu.dot_dimension_numbers<[1], [0], [0], [1], [0, 0, 1, 1], [], []>} : vector<64x64xf32>, vector<64x512xf32>, vector<64x512xf32> -> vector<64x512xf32>
    %c0_12 = arith.constant 0 : index
    %c0_13 = arith.constant 0 : index
    %17 = vector.load %arg7[%c0_12, %c0_13] : memref<64x1xf32, #tpu.memory_space<vmem>>, vector<64x1xf32>
    %18 = vector.broadcast %17 : vector<64x1xf32> to vector<64x512xf32>
    %19 = arith.addf %16, %18 : vector<64x512xf32>
    %20 = math.tanh %19 : vector<64x512xf32>
    %c0_14 = arith.constant 0 : index
    %c0_15 = arith.constant 0 : index
    %21 = vector.load %arg8[%c0_14, %c0_15] : memref<64x64xf32, #tpu.memory_space<vmem>>, vector<64x64xf32>
    %cst_16 = arith.constant dense<0.000000e+00> : vector<64x512xf32>
    %22 = tpu.matmul %21, %20, %cst_16 {dimension_numbers = #tpu.dot_dimension_numbers<[1], [0], [0], [1], [0, 0, 1, 1], [], []>} : vector<64x64xf32>, vector<64x512xf32>, vector<64x512xf32> -> vector<64x512xf32>
    %c0_17 = arith.constant 0 : index
    %c0_18 = arith.constant 0 : index
    %23 = vector.load %arg9[%c0_17, %c0_18] : memref<64x1xf32, #tpu.memory_space<vmem>>, vector<64x1xf32>
    %24 = vector.broadcast %23 : vector<64x1xf32> to vector<64x512xf32>
    %25 = arith.addf %22, %24 : vector<64x512xf32>
    %26 = math.tanh %25 : vector<64x512xf32>
    %c0_19 = arith.constant 0 : index
    %c0_20 = arith.constant 0 : index
    %27 = vector.load %arg10[%c0_19, %c0_20] : memref<2x64xf32, #tpu.memory_space<vmem>>, vector<2x64xf32>
    %cst_21 = arith.constant dense<0.000000e+00> : vector<2x512xf32>
    %28 = tpu.matmul %27, %26, %cst_21 {dimension_numbers = #tpu.dot_dimension_numbers<[1], [0], [0], [1], [0, 0, 1, 1], [], []>} : vector<2x64xf32>, vector<64x512xf32>, vector<2x512xf32> -> vector<2x512xf32>
    %c0_22 = arith.constant 0 : index
    %c0_23 = arith.constant 0 : index
    %29 = vector.load %arg11[%c0_22, %c0_23] : memref<2x1xf32, #tpu.memory_space<vmem>>, vector<2x1xf32>
    %30 = vector.broadcast %29 : vector<2x1xf32> to vector<2x512xf32>
    %31 = arith.addf %28, %30 : vector<2x512xf32>
    %32 = arith.negf %31 : vector<2x512xf32>
    %33 = math.exp %32 : vector<2x512xf32>
    %cst_24 = arith.constant 1.000000e+00 : f32
    %34 = vector.broadcast %cst_24 : f32 to vector<2x512xf32>
    %35 = arith.addf %34, %33 : vector<2x512xf32>
    %36 = arith.divf %34, %35 : vector<2x512xf32>
    %c0_25 = arith.constant 0 : index
    %c0_26 = arith.constant 0 : index
    %37 = vector.load %arg12[%c0_25, %c0_26] : memref<2x512xf32, #tpu.memory_space<vmem>>, vector<2x512xf32>
    tpu.vector_store %arg12[%c0_25, %c0_26], %36 {strides = array<i32>} : memref<2x512xf32, #tpu.memory_space<vmem>>, vector<2x512xf32>,
    return
  }
  func.func @transform_0(%arg0: i32) -> (i32, i32) {
    %c0_i32 = arith.constant 0 : i32
    %c0_i32_0 = arith.constant 0 : i32
    return %c0_i32, %arg0 : i32, i32
  }
  func.func @transform_1(%arg0: i32) -> (i32, i32) {
    %c0_i32 = arith.constant 0 : i32
    %c0_i32_0 = arith.constant 0 : i32
    %c0_i32_1 = arith.constant 0 : i32
    return %c0_i32, %c0_i32_0 : i32, i32
  }
  func.func @transform_2(%arg0: i32) -> (i32, i32) {
    %c0_i32 = arith.constant 0 : i32
    %c0_i32_0 = arith.constant 0 : i32
    %c0_i32_1 = arith.constant 0 : i32
    return %c0_i32, %c0_i32_0 : i32, i32
  }
  func.func @transform_3(%arg0: i32) -> (i32, i32) {
    %c0_i32 = arith.constant 0 : i32
    %c0_i32_0 = arith.constant 0 : i32
    %c0_i32_1 = arith.constant 0 : i32
    return %c0_i32, %c0_i32_0 : i32, i32
  }
  func.func @transform_4(%arg0: i32) -> (i32, i32) {
    %c0_i32 = arith.constant 0 : i32
    %c0_i32_0 = arith.constant 0 : i32
    %c0_i32_1 = arith.constant 0 : i32
    return %c0_i32, %c0_i32_0 : i32, i32
  }
  func.func @transform_5(%arg0: i32) -> (i32, i32) {
    %c0_i32 = arith.constant 0 : i32
    %c0_i32_0 = arith.constant 0 : i32
    %c0_i32_1 = arith.constant 0 : i32
    return %c0_i32, %c0_i32_0 : i32, i32
  }
  func.func @transform_6(%arg0: i32) -> (i32, i32) {
    %c0_i32 = arith.constant 0 : i32
    %c0_i32_0 = arith.constant 0 : i32
    %c0_i32_1 = arith.constant 0 : i32
    return %c0_i32, %c0_i32_0 : i32, i32
  }
  func.func @transform_7(%arg0: i32) -> (i32, i32) {
    %c0_i32 = arith.constant 0 : i32
    %c0_i32_0 = arith.constant 0 : i32
    %c0_i32_1 = arith.constant 0 : i32
    return %c0_i32, %c0_i32_0 : i32, i32
  }
  func.func @transform_8(%arg0: i32) -> (i32, i32) {
    %c0_i32 = arith.constant 0 : i32
    %c0_i32_0 = arith.constant 0 : i32
    %c0_i32_1 = arith.constant 0 : i32
    return %c0_i32, %c0_i32_0 : i32, i32
  }
  func.func @transform_9(%arg0: i32) -> (i32, i32) {
    %c0_i32 = arith.constant 0 : i32
    %c0_i32_0 = arith.constant 0 : i32
    %c0_i32_1 = arith.constant 0 : i32
    return %c0_i32, %c0_i32_0 : i32, i32
  }
  func.func @transform_10(%arg0: i32) -> (i32, i32) {
    %c0_i32 = arith.constant 0 : i32
    %c0_i32_0 = arith.constant 0 : i32
    %c0_i32_1 = arith.constant 0 : i32
    return %c0_i32, %c0_i32_0 : i32, i32
  }
  func.func @transform_11(%arg0: i32) -> (i32, i32) {
    %c0_i32 = arith.constant 0 : i32
    %c0_i32_0 = arith.constant 0 : i32
    return %c0_i32, %arg0 : i32, i32
  }
}

</mosaic_0001>

<bundles_post_ra>
// kernel: tpu_custom_call.1
= control target key start
LH: loop header
LB: loop body
LE: loop exit
PB: predicated region body
PF: predicated region fallthrough
CT: control target
= control target key end

     0   :  { %s2966_s0 = inlined_call_operand.vmem [shape: f32[1,1024], index: 0, kind: input, shape index: {}]   ;;  %s2967_s1 = inlined_call_operand.vmem [shape: f32[64,1], index: 1, kind: input, shape index: {}]   ;;  %s2968_s2 = inlined_call_operand.vmem [shape: f32[64,1], index: 2, kind: input, shape index: {}]   ;;  %s2969_s3 = inlined_call_operand.vmem [shape: f32[64,64], index: 3, kind: input, shape index: {}]   ;;  %s2970_s4 = inlined_call_operand.vmem [shape: f32[64,1], index: 4, kind: input, shape index: {}]   ;;  %s2971_s5 = inlined_call_operand.vmem [shape: f32[64,64], index: 5, kind: input, shape index: {}]   ;;  %s2972_s6 = inlined_call_operand.vmem [shape: f32[64,1], index: 6, kind: input, shape index: {}]   ;;  %s2973_s7 = inlined_call_operand.vmem [shape: f32[64,64], index: 7, kind: input, shape index: {}]   ;;  %s2974_s8 = inlined_call_operand.vmem [shape: f32[64,1], index: 8, kind: input, shape index: {}]   ;;  %s2975_s9 = inlined_call_operand.vmem [shape: f32[2,64], index: 9, kind: input, shape index: {}]   ;;  %s2976_s10 = inlined_call_operand.vmem [shape: f32[2,1], index: 10, kind: input, shape index: {}]   ;;  %s2977_s11 = inlined_call_operand.hbm [shape: f32[2,1024], index: 11, kind: output, shape index: {}]  }
   0x1   :  { %2978 = sst [smem:[#allocation5_spill]] %s2966_s0 }
   0x2   :  { %16 = vsyncpa [#allocation3], 0 }
   0x3   :  { %18 = vsyncpa [#allocation3 + $0x1], 0  ;;  %s2522_s17 = smov 0   ;;  %s2524_s18 = smov 0  }
   0x4   :  { %s2526_s19 = smov 0   ;;  %s2528_s20 = smov 0  }
   0x5 LB: > { %s2543_s21 = sadd.s32 4294967295, %s2456_s20   ;;  %s1884_s22 = sadd.s32 4294967294, %s2456_s20   ;;  %s2456_s20 = sphi %s2528_s20, %s2985_s20   ;;  %s2452_s19 = sphi %s2526_s19, %s2984_s19   ;;  %s2448_s18 = sphi %s2524_s18, %s2983_s18   ;;  %s2444_s17 = sphi %s2522_s17, %s2982_s17  }
   0x6   : > { %s2547_s23 = sadd.s32 1, %s2456_s20   ;;  %s267_s24 = sadd.s32 1, %s2452_s19 }
   0x7   : > { %s264_s25 = ssub.s32 %s2456_s20, %s2547_s23  ;;  %p277_p0 = scmp.ne.s32.totalorder %s2452_s19, %s2448_s18 }
   0x8   : > { %p265_p1 = scmp.eq.s32.totalorder %s264_s25, 0  ;;  %p278_p2 = scmp.eq.s32.totalorder %s2543_s21, 1 }
   0x9   : > { %p283_p3 = scmp.ne.s32.totalorder %s2448_s18, %s2444_s17  ;;  %p284_p4 = scmp.eq.s32.totalorder %s1884_s22, 1 }
   0xa   : > { %s2558_s26 = scalar_select %p265_p1, %s2452_s19, %s267_s24  }
   0xb   : > { %p2560_p5 = por %p278_p2, %p277_p0  ;;  %p2564_p6 = por %p284_p4, %p283_p3 }
   0xc   : > { %p1887_p7 = scmp.ge.s32.totalorder %s2456_s20, 1  ;;  %p340_p8 = scmp.lt.s32.totalorder %s2456_s20, 3 }
   0xe   : > { %p341_p9 = pnand %p1887_p7, %p340_p8 }
   0xf   : > { %v487_v0 = vld [vmem:[%s2968_s2] sm:$0xff] (!%p341_p9)  ;;  %v2458_v2 = vmov (!%p341_p9), 0   ;;  %v488_v3 = vld [vmem:[%s2968_s2 + $0x8] sm:$0xff] (!%p341_p9)  ;;  %v389_v5 = vld [vmem:[%s2967_s1 + $0x18] sm:$0xff] (!%p341_p9)  ;;  %v2459_v31 = vmov (!%p341_p9), 0.0   ;;  %s1889_s12 = sshll.u32 (!%p341_p9), %s2543_s21, 2  ;;  %v435_v43 = vlaneseq (!%p341_p9) }
  0x10   : > { %344 = sbr.rel (%p341_p9) target bundleno = 1240 (0x4d8), region = 64  ;;  %v386_v1 = vld [vmem:[%s2967_s1] sm:$0xff] (!%p341_p9)  ;;  %2121 = vset.pattern.permute.xlu1 (!%p341_p9), %v2458_v2  ;;  %2120 = vset.pattern.permute.xlu0 (!%p341_p9), %v2458_v2  ;;  %v387_v4 = vld [vmem:[%s2967_s1 + $0x8] sm:$0xff] (!%p341_p9)  ;;  %v388_v6 = vld [vmem:[%s2967_s1 + $0x10] sm:$0xff] (!%p341_p9)  ;;  %p380_p10 = scmp.lt.s32.totalorder (!%p341_p9), %s1889_s12, 7  ;;  %vm655_vm0 = vcmask (!%p341_p9), 523264  }
  0x11   : > { %497 = vperm.xlu1 (!%p341_p9), %2121, %v487_v0   ;;  %396 = vperm.xlu0 (!%p341_p9), %2120, %v386_v1   ;;  %v490_v7 = vld [vmem:[%s2968_s2 + $0x18] sm:$0xff] (!%p341_p9)  ;;  %v489_v8 = vld [vmem:[%s2968_s2 + $0x10] sm:$0xff] (!%p341_p9)  ;;  %v391_v9 = vld [vmem:[%s2967_s1 + $0x28] sm:$0xff] (!%p341_p9)  ;;  %v2696_v44 = vshrl.u32 (!%p341_p9), %v435_v43, 7  ;;  %s2981_s0 = sld [smem:[#allocation5_spill]] (!%p341_p9)  ;;  %s376_s16 = sand.u32 (!%p341_p9), 1, %s2448_s18  }
  0x12   : > { %v390_v10 = vld [vmem:[%s2967_s1 + $0x20] sm:$0xff] (!%p341_p9)  ;;  %v492_v11 = vld [vmem:[%s2968_s2 + $0x28] sm:$0xff] (!%p341_p9)  ;;  %v393_v13 = vld [vmem:[%s2967_s1 + $0x38] sm:$0xff] (!%p341_p9)  ;;  %744 = vmatprep.mubr.f32.mxu0 (!%p341_p9), %v2459_v31  ;;  %857 = vmatprep.mubr.f32.mxu1 (!%p341_p9), %v2459_v31  ;;  %s1888_s22 = sshll.u32 (!%p341_p9), %s376_s16, 3  ;;  %s1949_s24 = sshll.u32 (!%p341_p9), %s2543_s21, 7 }
  0x13   : > { %v491_v12 = vld [vmem:[%s2968_s2 + $0x20] sm:$0xff] (!%p341_p9)  ;;  %v392_v14 = vld [vmem:[%s2967_s1 + $0x30] sm:$0xff] (!%p341_p9)  ;;  %v494_v15 = vld [vmem:[%s2968_s2 + $0x38] sm:$0xff] (!%p341_p9)  ;;  %v437_v45 = vsub.s32 (!%p341_p9), 0, %v2696_v44  ;;  %v441_v46 = vsub.s32 (!%p341_p9), 1, %v2696_v44  ;;  %v445_v47 = vsub.s32 (!%p341_p9), 2, %v2696_v44  ;;  %s2924_s13 = scalar_lea.hbm (!%p341_p9), %s2977_s11, %s1949_s24 }
  0x14   : > { %v493_v16 = vld [vmem:[%s2968_s2 + $0x30] sm:$0xff] (!%p341_p9)  ;;  %v608_v17 = vld [vmem:[%s2970_s4 + $0x8] sm:$0xff] (!%p341_p9)  ;;  %v607_v18 = vld [vmem:[%s2970_s4] sm:$0xff] (!%p341_p9)  ;;  %v449_v48 = vsub.s32 (!%p341_p9), 3, %v2696_v44  ;;  %s378_s25 = scalar_lea.vmem (!%p341_p9), [#allocation2], %s1888_s22  ;;  %s1814_s14 = scalar_lea.sflag (!%p341_p9), [#allocation3], %s376_s16 }
  0x15   : > { %502 = vperm.xlu1 (!%p341_p9), %2121, %v488_v3   ;;  %401 = vperm.xlu0 (!%p341_p9), %2120, %v387_v4   ;;  %v610_v19 = vld [vmem:[%s2970_s4 + $0x18] sm:$0xff] (!%p341_p9)  ;;  %v609_v20 = vld [vmem:[%s2970_s4 + $0x10] sm:$0xff] (!%p341_p9)  ;;  %v612_v21 = vld [vmem:[%s2970_s4 + $0x28] sm:$0xff] (!%p341_p9)  ;;  %s1828_s29 = sshll.u32 (!%p341_p9), %s378_s25, 4  ;;  %s2461_s21 = smov (!%p341_p9), [#allocation2]   ;;  %s2926_s29 = int_to_ptr.vmem [resolvable:$true] %s1828_s29 }
  0x16   : > { %v611_v22 = vld [vmem:[%s2970_s4 + $0x20] sm:$0xff] (!%p341_p9)  ;;  %v614_v23 = vld [vmem:[%s2970_s4 + $0x38] sm:$0xff] (!%p341_p9)  ;;  %v613_v24 = vld [vmem:[%s2970_s4 + $0x30] sm:$0xff] (!%p341_p9)  ;;  %s2398_s22 = sshll.u32 (!%p341_p9), %s2461_s21, 4  ;;  %s2399_s22 = int_to_ptr.vmem [resolvable:$false] %s2398_s22 }
  0x17   : > { %v947_v25 = vld [vmem:[%s2972_s6 + $0x8] sm:$0xff]  ;;  %v946_v26 = vld [vmem:[%s2972_s6] sm:$0xff]  ;;  %v949_v27 = vld [vmem:[%s2972_s6 + $0x18] sm:$0xff]  ;;  %s2987_s12 = smov (!%p380_p10, %s1889_s12), 7  ;;  %p2401_p0 = scmp.lt.s32.totalorder %s2926_s29, %s2399_s22 }
  0x18   : > { %v948_v28 = vld [vmem:[%s2972_s6 + $0x10] sm:$0xff]  ;;  %v951_v29 = vld [vmem:[%s2972_s6 + $0x28] sm:$0xff]  ;;  %v950_v30 = vld [vmem:[%s2972_s6 + $0x20] sm:$0xff]  ;;  %s382_s15 = scalar_lea.vmem %s2981_s0, %s2987_s12  ;;  %s2400_s0 = scalar_lea.vmem %s2399_s22, 256 }
  0x19   : > { %411 = vperm.xlu1 %2121, %v389_v5   ;;  %406 = vperm.xlu0 %2120, %v388_v6   ;;  %v953_v32 = vld [vmem:[%s2972_s6 + $0x38] sm:$0xff]  ;;  %v952_v33 = vld [vmem:[%s2972_s6 + $0x30] sm:$0xff]  ;;  %v1285_v34 = vld [vmem:[%s2974_s8 + $0x8] sm:$0xff] }
  0x1a   : > { %v1284_v35 = vld [vmem:[%s2974_s8] sm:$0xff]  ;;  %v1287_v36 = vld [vmem:[%s2974_s8 + $0x18] sm:$0xff]  ;;  %v1286_v37 = vld [vmem:[%s2974_s8 + $0x10] sm:$0xff] }
  0x1b   : > { %v1289_v38 = vld [vmem:[%s2974_s8 + $0x28] sm:$0xff]  ;;  %v1288_v39 = vld [vmem:[%s2974_s8 + $0x20] sm:$0xff]  ;;  %v1291_v40 = vld [vmem:[%s2974_s8 + $0x38] sm:$0xff] }
  0x1c   : > { %v1290_v41 = vld [vmem:[%s2974_s8 + $0x30] sm:$0xff]  ;;  %v1615_v42 = vld [vmem:[%s2976_s10] sm:$0x3] }
  0x1d   : > { %512 = vperm.xlu1 %2121, %v490_v7   ;;  %507 = vperm.xlu0 %2120, %v489_v8   ;;  %v385_v49 = vld [vmem:[%s382_s15] sm:$0xf]  ;;  %s2394_s15 = scalar_lea.vmem %s2926_s29, 128 }
  0x1e   : > { %v2705_v50 = vrot.slane %v385_v49, %v437_v45  ;;  %v2707_v51 = vrot.slane %v385_v49, %v441_v46  ;;  %v2709_v52 = vrot.slane %v385_v49, %v445_v47  ;;  %v2711_v53 = vrot.slane %v385_v49, %v449_v48  ;;  %p2395_p11 = scmp.ne.s32.totalorder %s2926_s29, %s2394_s15  ;;  %p2402_p1 = scmp.lt.s32.totalorder %s2400_s0, %s2394_s15 }
  0x20   : > { %p2396_p12 = pnand %p2395_p11, %p2560_p5  ;;  %p2403_p2 = por %p2402_p1, %p2401_p0 }
  0x21   : > { %421 = vperm.xlu1 %2121, %v391_v9   ;;  %416 = vperm.xlu0 %2120, %v390_v10  }
  0x22   : > { %p2397_p13 = pneg %p2396_p12 }
  0x24   : > { %p2404_p3 = pnand %p2403_p2, %p2397_p13 }
  0x25   : > { %522 = vperm.xlu1 %2121, %v492_v11   ;;  %517 = vperm.xlu0 %2120, %v491_v12  }
  0x29   : > { %431 = vperm.xlu1 %2121, %v393_v13   ;;  %426 = vperm.xlu0 %2120, %v392_v14  }
  0x2d   : > { %532 = vperm.xlu1 %2121, %v494_v15   ;;  %527 = vperm.xlu0 %2120, %v493_v16  }
  0x31   : > { %622 = vperm.xlu1 %2121, %v608_v17   ;;  %617 = vperm.xlu0 %2120, %v607_v18  }
  0x35   : > { %632 = vperm.xlu1 %2121, %v610_v19   ;;  %627 = vperm.xlu0 %2120, %v609_v20  }
  0x39   : > { %642 = vperm.xlu1 %2121, %v612_v21   ;;  %637 = vperm.xlu0 %2120, %v611_v22  }
  0x3d   : > { %652 = vperm.xlu1 %2121, %v614_v23   ;;  %647 = vperm.xlu0 %2120, %v613_v24  }
  0x41   : > { %961 = vperm.xlu1 %2121, %v947_v25   ;;  %956 = vperm.xlu0 %2120, %v946_v26  }
  0x45   : > { %971 = vperm.xlu1 %2121, %v949_v27   ;;  %966 = vperm.xlu0 %2120, %v948_v28  }
  0x49   : > { %981 = vperm.xlu1 %2121, %v951_v29   ;;  %976 = vperm.xlu0 %2120, %v950_v30  }
  0x4d   : > { %991 = vperm.xlu1 %2121, %v953_v32   ;;  %986 = vperm.xlu0 %2120, %v952_v33  }
  0x51   : > { %1299 = vperm.xlu1 %2121, %v1285_v34   ;;  %1294 = vperm.xlu0 %2120, %v1284_v35  }
  0x55   : > { %1309 = vperm.xlu1 %2121, %v1287_v36   ;;  %1304 = vperm.xlu0 %2120, %v1286_v37  }
  0x59   : > { %1319 = vperm.xlu1 %2121, %v1289_v38   ;;  %1314 = vperm.xlu0 %2120, %v1288_v39  }
  0x5d   : > { %1329 = vperm.xlu1 %2121, %v1291_v40   ;;  %1324 = vperm.xlu0 %2120, %v1290_v41  }
  0x61   : > { %1618 = vperm.xlu0 %2120, %v1615_v42  }
  0x90   : > { %v498_v54 = vpop.permute.xlu1 %497  ;;  %v397_v55 = vpop.permute.xlu0 %396 }
  0x91   : > { %v455_v56 = vmul.f32 %v2705_v50, %v397_v55  ;;  %v456_v57 = vmul.f32 %v2707_v51, %v397_v55  ;;  %v457_v58 = vmul.f32 %v2709_v52, %v397_v55  ;;  %v458_v59 = vmul.f32 %v2711_v53, %v397_v55 }
  0x93   : > { %v535_v60 = vadd.f32 %v498_v54, %v455_v56  ;;  %v536_v61 = vadd.f32 %v498_v54, %v456_v57  ;;  %v537_v62 = vadd.f32 %v498_v54, %v457_v58  ;;  %v538_v63 = vadd.f32 %v498_v54, %v458_v59 }
  0x94   : > { %v503_v0 = vpop.permute.xlu1 %502  ;;  %v402_v1 = vpop.permute.xlu0 %401 }
  0x95   : > { %2122 = vtanh.f32 %v535_v60  ;;  %v459_v2 = vmul.f32 %v2705_v50, %v402_v1  ;;  %v460_v3 = vmul.f32 %v2707_v51, %v402_v1  ;;  %v461_v4 = vmul.f32 %v2709_v52, %v402_v1 }
  0x96   : > { %2124 = vtanh.f32 %v536_v61  ;;  %v462_v5 = vmul.f32 %v2711_v53, %v402_v1 }
  0x97   : > { %2126 = vtanh.f32 %v537_v62  ;;  %v539_v6 = vadd.f32 %v503_v0, %v459_v2  ;;  %v540_v7 = vadd.f32 %v503_v0, %v460_v3  ;;  %v541_v8 = vadd.f32 %v503_v0, %v461_v4 }
  0x98   : > { %2128 = vtanh.f32 %v538_v63  ;;  %v542_v9 = vadd.f32 %v503_v0, %v462_v5  ;;  %v412_v10 = vpop.permute.xlu1 %411  ;;  %v407_v11 = vpop.permute.xlu0 %406 }
  0x99   : > { %2130 = vtanh.f32 %v539_v6  ;;  %v467_v12 = vmul.f32 %v2705_v50, %v412_v10  ;;  %v468_v13 = vmul.f32 %v2707_v51, %v412_v10  ;;  %v469_v14 = vmul.f32 %v2709_v52, %v412_v10 }
  0x9a   : > { %2132 = vtanh.f32 %v540_v7  ;;  %v470_v15 = vmul.f32 %v2711_v53, %v412_v10  ;;  %v463_v18 = vmul.f32 %v2705_v50, %v407_v11  ;;  %v464_v22 = vmul.f32 %v2707_v51, %v407_v11 }
  0x9b   : > { %2134 = vtanh.f32 %v541_v8  ;;  %v465_v25 = vmul.f32 %v2709_v52, %v407_v11  ;;  %v466_v28 = vmul.f32 %v2711_v53, %v407_v11 }
  0x9c   : > { %2136 = vtanh.f32 %v542_v9  ;;  %v513_v16 = vpop.permute.xlu1 %512  ;;  %v508_v17 = vpop.permute.xlu0 %507 }
  0x9d   : > { %v547_v19 = vadd.f32 %v513_v16, %v467_v12  ;;  %v548_v20 = vadd.f32 %v513_v16, %v468_v13  ;;  %v549_v21 = vadd.f32 %v513_v16, %v469_v14  ;;  %v550_v23 = vadd.f32 %v513_v16, %v470_v15 }
  0x9e   : > { %v543_v26 = vadd.f32 %v508_v17, %v463_v18  ;;  %v544_v29 = vadd.f32 %v508_v17, %v464_v22  ;;  %v545_v34 = vadd.f32 %v508_v17, %v465_v25  ;;  %v546_v36 = vadd.f32 %v508_v17, %v466_v28 }
  0x9f   : > { %v2123_v24 = vpop.eup %2122  ;;  %2138 = vtanh.f32 %v547_v19 }
  0xa0   : > { %v2125_v27 = vpop.eup %2124  ;;  %2140 = vtanh.f32 %v548_v20  ;;  %v422_v30 = vpop.permute.xlu1 %421 }
  0xa1   : > { %v417_v32 = vpop.permute.xlu0 %416  ;;  %v2127_v33 = vpop.eup %2126  ;;  %2142 = vtanh.f32 %v549_v21  ;;  %v475_v38 = vmul.f32 %v2705_v50, %v422_v30  ;;  %v476_v39 = vmul.f32 %v2707_v51, %v422_v30  ;;  %v477_v40 = vmul.f32 %v2709_v52, %v422_v30 }
  0xa2   : > { %v2129_v35 = vpop.eup %2128  ;;  %2144 = vtanh.f32 %v550_v23  ;;  %v478_v42 = vmul.f32 %v2711_v53, %v422_v30  ;;  %v471_v43 = vmul.f32 %v2705_v50, %v417_v32  ;;  %v472_v45 = vmul.f32 %v2707_v51, %v417_v32 }
  0xa3   : > { %v2131_v37 = vpop.eup %2130  ;;  %2146 = vtanh.f32 %v543_v26  ;;  %v473_v57 = vmul.f32 %v2709_v52, %v417_v32  ;;  %v474_v60 = vmul.f32 %v2711_v53, %v417_v32 }
  0xa4   : > { %v2133_v41 = vpop.eup %2132  ;;  %2148 = vtanh.f32 %v544_v29  ;;  %v523_v46 = vpop.permute.xlu1 %522  ;;  %v1952_v59 = vpack.c.bf16 %v2131_v37, %v2123_v24 }
  0xa5   : > { %v518_v47 = vpop.permute.xlu0 %517  ;;  %v2135_v48 = vpop.eup %2134  ;;  %2150 = vtanh.f32 %v545_v34  ;;  %v555_v49 = vadd.f32 %v523_v46, %v475_v38  ;;  %v556_v54 = vadd.f32 %v523_v46, %v476_v39  ;;  %v557_v55 = vadd.f32 %v523_v46, %v477_v40 }
  0xa6   : > { %v2137_v56 = vpop.eup %2136  ;;  %2152 = vtanh.f32 %v546_v36  ;;  %v558_v58 = vadd.f32 %v523_v46, %v478_v42  ;;  %v551_v61 = vadd.f32 %v518_v47, %v471_v43  ;;  %v1950_v62 = vpack.c.bf16 %v2133_v41, %v2125_v27 }
  0xa7   : > { %2154 = vtanh.f32 %v555_v49  ;;  %v552_v63 = vadd.f32 %v518_v47, %v472_v45  ;;  %v1966_v0 = vpack.c.bf16 %v2137_v56, %v2129_v35  ;;  %v1968_v1 = vpack.c.bf16 %v2135_v48, %v2127_v33 }
  0xa8   : > { %2156 = vtanh.f32 %v556_v54  ;;  %v432_v2 = vpop.permute.xlu1 %431  ;;  %v553_v5 = vadd.f32 %v518_v47, %v473_v57  ;;  %1951 = vmatprep.subr.bf16.mxu0 %v1950_v62  ;;  %v554_v7 = vadd.f32 %v518_v47, %v474_v60  ;;  %v599_v62 = vld [vmem:[%s2969_s3] sm:$0xff] }
  0xa9   : > { %v427_v3 = vpop.permute.xlu0 %426  ;;  %v2139_v4 = vpop.eup %2138  ;;  %2158 = vtanh.f32 %v557_v55  ;;  %1967 = vmatprep.subr.bf16.mxu1 %v1966_v0  ;;  %1953 = vmatpush1.bf16.msra.mxu0 %v1952_v59  ;;  %v483_v9 = vmul.f32 %v2705_v50, %v432_v2  ;;  %v484_v10 = vmul.f32 %v2707_v51, %v432_v2  ;;  %v485_v11 = vmul.f32 %v2709_v52, %v432_v2  ;;  %v601_v0 = vld [vmem:[%s2969_s3 + $0x10] sm:$0xff] }
  0xaa   : > { %v2141_v6 = vpop.eup %2140  ;;  %2160 = vtanh.f32 %v558_v58  ;;  %1969 = vmatpush1.bf16.msra.mxu1 %v1968_v1  ;;  %v486_v13 = vmul.f32 %v2711_v53, %v432_v2  ;;  %v479_v14 = vmul.f32 %v2705_v50, %v427_v3  ;;  %v480_v22 = vmul.f32 %v2707_v51, %v427_v3  ;;  %v602_v1 = vld [vmem:[%s2969_s3 + $0x18] sm:$0xff]  ;;  %v603_v2 = vld [vmem:[%s2969_s3 + $0x20] sm:$0xff] }
  0xab   : > { %v2143_v8 = vpop.eup %2142  ;;  %2162 = vtanh.f32 %v551_v61  ;;  %v481_v23 = vmul.f32 %v2709_v52, %v427_v3  ;;  %v482_v26 = vmul.f32 %v2711_v53, %v427_v3  ;;  %v604_v3 = vld [vmem:[%s2969_s3 + $0x28] sm:$0xff] }
  0xac   : > { %v2145_v12 = vpop.eup %2144  ;;  %2164 = vtanh.f32 %v552_v63  ;;  %v533_v15 = vpop.permute.xlu1 %532  ;;  %v600_v63 = vld [vmem:[%s2969_s3 + $0x8] sm:$0xff] }
  0xad   : > { %v528_v16 = vpop.permute.xlu0 %527  ;;  %v2147_v17 = vpop.eup %2146  ;;  %2166 = vtanh.f32 %v553_v5  ;;  %v563_v18 = vadd.f32 %v533_v15, %v483_v9  ;;  %v564_v19 = vadd.f32 %v533_v15, %v484_v10  ;;  %v565_v20 = vadd.f32 %v533_v15, %v485_v11  ;;  %v606_v5 = vld [vmem:[%s2969_s3 + $0x38] sm:$0xff] }
  0xae   : > { %v2149_v21 = vpop.eup %2148  ;;  %2168 = vtanh.f32 %v554_v7  ;;  %v566_v24 = vadd.f32 %v533_v15, %v486_v13  ;;  %v559_v27 = vadd.f32 %v528_v16, %v479_v14  ;;  %v560_v29 = vadd.f32 %v528_v16, %v480_v22 }
  0xaf   : > { %v2151_v25 = vpop.eup %2150  ;;  %2170 = vtanh.f32 %v563_v18  ;;  %v1954_v50 = vpack.c.bf16 %v2141_v6, %v2149_v21  ;;  %v1956_v30 = vpack.c.bf16 %v2139_v4, %v2147_v17  ;;  %v561_v34 = vadd.f32 %v528_v16, %v481_v23  ;;  %v605_v4 = vld [vmem:[%s2969_s3 + $0x30] sm:$0xff] }
  0xb0   : > { %v2153_v28 = vpop.eup %2152  ;;  %2172 = vtanh.f32 %v564_v19  ;;  %v1972_v32 = vpack.c.bf16 %v2143_v8, %v2151_v25  ;;  %v562_v52 = vadd.f32 %v528_v16, %v482_v26  ;;  %v623_v14 = vpop.permute.xlu1 %622 }
  0xb1   : > { %v2155_v33 = vpop.eup %2154  ;;  %2174 = vtanh.f32 %v565_v20  ;;  %1955 = vmatprep.subr.bf16.mxu0 %v1954_v50  ;;  %v1970_v35 = vpack.c.bf16 %v2145_v12, %v2153_v28  ;;  %v618_v6 = vpop.permute.xlu0 %617 }
  0xb2   : > { %v2157_v51 = vpop.eup %2156  ;;  %2176 = vtanh.f32 %v566_v24  ;;  %1957 = vmatpush1.bf16.msra.mxu0 %v1956_v30 }
  0xb3   : > { %v2159_v36 = vpop.eup %2158  ;;  %2178 = vtanh.f32 %v559_v27  ;;  %1971 = vmatprep.subr.bf16.mxu1 %v1970_v35 }
  0xb4   : > { %v2161_v53 = vpop.eup %2160  ;;  %2180 = vtanh.f32 %v560_v29  ;;  %1973 = vmatpush1.bf16.msra.mxu1 %v1972_v32  ;;  %v633_v32 = vpop.permute.xlu1 %632 }
  0xb5   : > { %v2163_v37 = vpop.eup %2162  ;;  %2182 = vtanh.f32 %v561_v34  ;;  %v628_v23 = vpop.permute.xlu0 %627 }
  0xb6   : > { %v2165_v38 = vpop.eup %2164  ;;  %2184 = vtanh.f32 %v562_v52  ;;  %v1960_v39 = vpack.c.bf16 %v2155_v33, %v2163_v37 }
  0xb7   : > { %v2167_v40 = vpop.eup %2166  ;;  %v1958_v41 = vpack.c.bf16 %v2157_v51, %v2165_v38 }
  0xb8   : > { %v2169_v42 = vpop.eup %2168  ;;  %v1976_v43 = vpack.c.bf16 %v2159_v36, %v2167_v40 }
  0xb9   : > { %v2171_v45 = vpop.eup %2170  ;;  %1959 = vmatprep.subr.bf16.mxu0 %v1958_v41  ;;  %v1974_v46 = vpack.c.bf16 %v2161_v53, %v2169_v42  ;;  %v638_v42 = vpop.permute.xlu0 %637 }
  0xba   : > { %v2173_v47 = vpop.eup %2172  ;;  %1961 = vmatpush1.bf16.msra.mxu0 %v1960_v39 }
  0xbb   : > { %v2175_v48 = vpop.eup %2174  ;;  %1975 = vmatprep.subr.bf16.mxu1 %v1974_v46 }
  0xbc   : > { %v2177_v49 = vpop.eup %2176  ;;  %1977 = vmatpush1.bf16.msra.mxu1 %v1976_v43 }
  0xbd   : > { %v2179_v54 = vpop.eup %2178 }
  0xbe   : > { %v2181_v55 = vpop.eup %2180  ;;  %v1964_v56 = vpack.c.bf16 %v2171_v45, %v2179_v54 }
  0xbf   : > { %v2183_v57 = vpop.eup %2182  ;;  %v1962_v58 = vpack.c.bf16 %v2173_v47, %v2181_v55 }
  0xc0   : > { %v2185_v59 = vpop.eup %2184  ;;  %v1980_v60 = vpack.c.bf16 %v2175_v48, %v2183_v57 }
  0xc1   : > { %1963 = vmatprep.subr.bf16.mxu0 %v1962_v58  ;;  %v1978_v61 = vpack.c.bf16 %v2177_v49, %v2185_v59 }
  0xc2   : > { %1965 = vmatpush1.bf16.msra.mxu0 %v1964_v56 }
  0xc3   : > { %1979 = vmatprep.subr.bf16.mxu1 %v1978_v61 }
  0xc4   : > { %1981 = vmatpush1.bf16.msra.mxu1 %v1980_v60 }
  0xc5   : > { %1890 = vmatmul.mubr.msk.f32.vlgmr.msra.gmra.mrb[0].mxu0 %vm655_vm0, %v599_v62 }
  0xc6   : > { %750 = vmatprep.mubr.f32.mxu0 %v2459_v31 }
  0xc7   : > { %1898 = vmatmul.mubr.msk.f32.vlgmr.msra.gmra.mrb[0].mxu1 %vm655_vm0, %v599_v62  ;;  %v643_v62 = vpop.permute.xlu1 %642 }
  0xc8   : > { %863 = vmatprep.mubr.f32.mxu1 %v2459_v31 }
  0xc9   : > { %1891 = vmatmul.mubr.msk.f32.gmra.mrb[2].mxu0 %vm655_vm0, %v600_v63 }
  0xca   : > { %756 = vmatprep.mubr.f32.mxu0 %v2459_v31 }
  0xcb   : > { %1899 = vmatmul.mubr.msk.f32.gmra.mrb[2].mxu1 %vm655_vm0, %v600_v63 }
  0xcc   : > { %869 = vmatprep.mubr.f32.mxu1 %v2459_v31 }
  0xcd   : > { %1892 = vmatmul.mubr.msk.f32.gmra.mrb[4].mxu0 %vm655_vm0, %v601_v0 }
  0xce   : > { %762 = vmatprep.mubr.f32.mxu0 %v2459_v31 }
  0xcf   : > { %1900 = vmatmul.mubr.msk.f32.gmra.mrb[4].mxu1 %vm655_vm0, %v601_v0 }
  0xd0   : > { %875 = vmatprep.mubr.f32.mxu1 %v2459_v31 }
  0xd1   : > { %1893 = vmatmul.mubr.msk.f32.gmra.mrb[6].mxu0 %vm655_vm0, %v602_v1 }
  0xd2   : > { %768 = vmatprep.mubr.f32.mxu0 %v2459_v31 }
  0xd3   : > { %1901 = vmatmul.mubr.msk.f32.gmra.mrb[6].mxu1 %vm655_vm0, %v602_v1 }
  0xd4   : > { %881 = vmatprep.mubr.f32.mxu1 %v2459_v31 }
  0xd5   : > { %1894 = vmatmul.mubr.msk.f32.gmra.mrb[8].mxu0 %vm655_vm0, %v603_v2 }
  0xd6   : > { %774 = vmatprep.mubr.f32.mxu0 %v2459_v31 }
  0xd7   : > { %1902 = vmatmul.mubr.msk.f32.gmra.mrb[8].mxu1 %vm655_vm0, %v603_v2 }
  0xd8   : > { %887 = vmatprep.mubr.f32.mxu1 %v2459_v31 }
  0xd9   : > { %1895 = vmatmul.mubr.msk.f32.gmra.mrb[10].mxu0 %vm655_vm0, %v604_v3 }
  0xda   : > { %780 = vmatprep.mubr.f32.mxu0 %v2459_v31 }
  0xdb   : > { %1903 = vmatmul.mubr.msk.f32.gmra.mrb[10].mxu1 %vm655_vm0, %v604_v3 }
  0xdc   : > { %893 = vmatprep.mubr.f32.mxu1 %v2459_v31 }
  0xdd   : > { %1896 = vmatmul.mubr.msk.f32.gmra.mrb[12].mxu0 %vm655_vm0, %v605_v4 }
  0xde   : > { %786 = vmatprep.mubr.f32.mxu0 %v2459_v31 }
  0xdf   : > { %1904 = vmatmul.mubr.msk.f32.gmra.mrb[12].mxu1 %vm655_vm0, %v605_v4 }
  0xe0   : > { %899 = vmatprep.mubr.f32.mxu1 %v2459_v31 }
  0xe1   : > { %1897 = vmatmul.mubr.msk.f32.gmra.mrb[14].mxu0 %vm655_vm0, %v606_v5 }
  0xe2   : > { %1082 = vmatprep.mubr.f32.mxu0 %v2459_v31 }
  0xe3   : > { %1905 = vmatmul.mubr.msk.f32.gmra.mrb[14].mxu1 %vm655_vm0, %v606_v5 }
  0xe4   : > { %1195 = vmatprep.mubr.f32.mxu1 %v2459_v31 }
 0x198   : > { %v746_v7 = vpop.f32.mrb[0].mxu0 }
 0x199   : > { %v747_v8 = vadd.f32 %v746_v7, %v618_v6  ;;  %v748_v9 = vpop.f32.mrb[1].mxu0 }
 0x19a   : > { %v859_v10 = vpop.f32.mrb[0].mxu1  ;;  %v749_v11 = vadd.f32 %v748_v9, %v618_v6 }
 0x19b   : > { %2186 = vtanh.f32 %v747_v8  ;;  %v860_v12 = vadd.f32 %v859_v10, %v618_v6  ;;  %v861_v13 = vpop.f32.mrb[1].mxu1 }
 0x19c   : > { %2188 = vtanh.f32 %v749_v11  ;;  %v862_v15 = vadd.f32 %v861_v13, %v618_v6  ;;  %v752_v16 = vpop.f32.mrb[2].mxu0  ;;  %v648_v13 = vpop.permute.xlu0 %647 }
 0x19d   : > { %2190 = vtanh.f32 %v860_v12  ;;  %v753_v17 = vadd.f32 %v752_v16, %v623_v14  ;;  %v754_v18 = vpop.f32.mrb[3].mxu0 }
 0x19e   : > { %2192 = vtanh.f32 %v862_v15  ;;  %v865_v19 = vpop.f32.mrb[2].mxu1  ;;  %v755_v20 = vadd.f32 %v754_v18, %v623_v14 }
 0x19f   : > { %2194 = vtanh.f32 %v753_v17  ;;  %v866_v21 = vadd.f32 %v865_v19, %v623_v14  ;;  %v867_v22 = vpop.f32.mrb[3].mxu1 }
 0x1a0   : > { %2196 = vtanh.f32 %v755_v20  ;;  %v868_v24 = vadd.f32 %v867_v22, %v623_v14  ;;  %v758_v25 = vpop.f32.mrb[4].mxu0 }
 0x1a1   : > { %2198 = vtanh.f32 %v866_v21  ;;  %v759_v26 = vadd.f32 %v758_v25, %v628_v23  ;;  %v760_v27 = vpop.f32.mrb[5].mxu0 }
 0x1a2   : > { %2200 = vtanh.f32 %v868_v24  ;;  %v871_v50 = vpop.f32.mrb[4].mxu1  ;;  %v761_v28 = vadd.f32 %v760_v27, %v628_v23 }
 0x1a3   : > { %2202 = vtanh.f32 %v759_v26  ;;  %v872_v29 = vadd.f32 %v871_v50, %v628_v23  ;;  %v873_v30 = vpop.f32.mrb[5].mxu1  ;;  %v653_v50 = vpop.permute.xlu1 %652 }
 0x1a4   : > { %2204 = vtanh.f32 %v761_v28  ;;  %v874_v33 = vadd.f32 %v873_v30, %v628_v23  ;;  %v764_v34 = vpop.f32.mrb[6].mxu0 }
 0x1a5   : > { %v2187_v35 = vpop.eup %2186  ;;  %2206 = vtanh.f32 %v872_v29  ;;  %v765_v51 = vadd.f32 %v764_v34, %v633_v32  ;;  %v766_v52 = vpop.f32.mrb[7].mxu0 }
 0x1a6   : > { %v2189_v36 = vpop.eup %2188  ;;  %2208 = vtanh.f32 %v874_v33  ;;  %v877_v53 = vpop.f32.mrb[6].mxu1  ;;  %v767_v37 = vadd.f32 %v766_v52, %v633_v32 }
 0x1a7   : > { %v2191_v38 = vpop.eup %2190  ;;  %2210 = vtanh.f32 %v765_v51  ;;  %v878_v39 = vadd.f32 %v877_v53, %v633_v32  ;;  %v879_v40 = vpop.f32.mrb[7].mxu1 }
 0x1a8   : > { %v2193_v41 = vpop.eup %2192  ;;  %2212 = vtanh.f32 %v767_v37  ;;  %v880_v43 = vadd.f32 %v879_v40, %v633_v32  ;;  %v770_v45 = vpop.f32.mrb[8].mxu0 }
 0x1a9   : > { %v2195_v46 = vpop.eup %2194  ;;  %2214 = vtanh.f32 %v878_v39  ;;  %v771_v47 = vadd.f32 %v770_v45, %v638_v42  ;;  %v772_v48 = vpop.f32.mrb[9].mxu0 }
 0x1aa   : > { %v2197_v49 = vpop.eup %2196  ;;  %2216 = vtanh.f32 %v880_v43  ;;  %v883_v54 = vpop.f32.mrb[8].mxu1  ;;  %v773_v55 = vadd.f32 %v772_v48, %v638_v42  ;;  %v1984_v56 = vpack.c.bf16 %v2195_v46, %v2187_v35 }
 0x1ab   : > { %v2199_v57 = vpop.eup %2198  ;;  %2218 = vtanh.f32 %v771_v47  ;;  %v884_v58 = vadd.f32 %v883_v54, %v638_v42  ;;  %v885_v59 = vpop.f32.mrb[9].mxu1  ;;  %v1982_v60 = vpack.c.bf16 %v2197_v49, %v2189_v36 }
 0x1ac   : > { %v2201_v61 = vpop.eup %2200  ;;  %2220 = vtanh.f32 %v773_v55  ;;  %v886_v63 = vadd.f32 %v885_v59, %v638_v42  ;;  %v776_v0 = vpop.f32.mrb[10].mxu0  ;;  %v2000_v1 = vpack.c.bf16 %v2199_v57, %v2191_v38 }
 0x1ad   : > { %v2203_v2 = vpop.eup %2202  ;;  %2222 = vtanh.f32 %v884_v58  ;;  %v777_v3 = vadd.f32 %v776_v0, %v643_v62  ;;  %v778_v4 = vpop.f32.mrb[11].mxu0  ;;  %1983 = vmatprep.subr.bf16.mxu0 %v1982_v60  ;;  %v1998_v5 = vpack.c.bf16 %v2201_v61, %v2193_v41 }
 0x1ae   : > { %v2205_v6 = vpop.eup %2204  ;;  %2224 = vtanh.f32 %v886_v63  ;;  %v889_v7 = vpop.f32.mrb[10].mxu1  ;;  %v779_v8 = vadd.f32 %v778_v4, %v643_v62  ;;  %1985 = vmatpush1.bf16.msra.mxu0 %v1984_v56  ;;  %v940_v4 = vld [vmem:[%s2971_s5 + $0x10] sm:$0xff] }
 0x1af   : > { %v2207_v9 = vpop.eup %2206  ;;  %2226 = vtanh.f32 %v777_v3  ;;  %v890_v10 = vadd.f32 %v889_v7, %v643_v62  ;;  %v891_v11 = vpop.f32.mrb[11].mxu1  ;;  %1999 = vmatprep.subr.bf16.mxu1 %v1998_v5  ;;  %v939_v3 = vld [vmem:[%s2971_s5 + $0x8] sm:$0xff]  ;;  %v941_v5 = vld [vmem:[%s2971_s5 + $0x18] sm:$0xff] }
 0x1b0   : > { %v2209_v12 = vpop.eup %2208  ;;  %2228 = vtanh.f32 %v779_v8  ;;  %v892_v14 = vadd.f32 %v891_v11, %v643_v62  ;;  %2001 = vmatpush1.bf16.msra.mxu1 %v2000_v1  ;;  %v782_v15 = vpop.f32.mrb[12].mxu0  ;;  %v943_v7 = vld [vmem:[%s2971_s5 + $0x28] sm:$0xff]  ;;  %v944_v8 = vld [vmem:[%s2971_s5 + $0x30] sm:$0xff] }
 0x1b1   : > { %v2211_v16 = vpop.eup %2210  ;;  %2230 = vtanh.f32 %v890_v10  ;;  %v783_v17 = vadd.f32 %v782_v15, %v648_v13  ;;  %v784_v18 = vpop.f32.mrb[13].mxu0 }
 0x1b2   : > { %v2213_v19 = vpop.eup %2212  ;;  %2232 = vtanh.f32 %v892_v14  ;;  %v895_v20 = vpop.f32.mrb[12].mxu1  ;;  %v785_v21 = vadd.f32 %v784_v18, %v648_v13  ;;  %v1988_v22 = vpack.c.bf16 %v2211_v16, %v2203_v2  ;;  %v938_v2 = vld [vmem:[%s2971_s5] sm:$0xff] }
 0x1b3   : > { %v2215_v23 = vpop.eup %2214  ;;  %2234 = vtanh.f32 %v783_v17  ;;  %v896_v24 = vadd.f32 %v895_v20, %v648_v13  ;;  %v897_v25 = vpop.f32.mrb[13].mxu1  ;;  %v1986_v26 = vpack.c.bf16 %v2213_v19, %v2205_v6  ;;  %v942_v6 = vld [vmem:[%s2971_s5 + $0x20] sm:$0xff] }
 0x1b4   : > { %v2217_v27 = vpop.eup %2216  ;;  %2236 = vtanh.f32 %v785_v21  ;;  %v898_v28 = vadd.f32 %v897_v25, %v648_v13  ;;  %v788_v29 = vpop.f32.mrb[14].mxu0  ;;  %v2004_v30 = vpack.c.bf16 %v2215_v23, %v2207_v9  ;;  %v945_v9 = vld [vmem:[%s2971_s5 + $0x38] sm:$0xff] }
 0x1b5   : > { %v2219_v32 = vpop.eup %2218  ;;  %2238 = vtanh.f32 %v896_v24  ;;  %v789_v33 = vadd.f32 %v788_v29, %v653_v50  ;;  %v790_v34 = vpop.f32.mrb[15].mxu0  ;;  %1987 = vmatprep.subr.bf16.mxu0 %v1986_v26  ;;  %v2002_v35 = vpack.c.bf16 %v2217_v27, %v2209_v12 }
 0x1b6   : > { %v2221_v51 = vpop.eup %2220  ;;  %2240 = vtanh.f32 %v898_v28  ;;  %v901_v52 = vpop.f32.mrb[14].mxu1  ;;  %v791_v36 = vadd.f32 %v790_v34, %v653_v50  ;;  %1989 = vmatpush1.bf16.msra.mxu0 %v1988_v22 }
 0x1b7   : > { %v2223_v53 = vpop.eup %2222  ;;  %2242 = vtanh.f32 %v789_v33  ;;  %v902_v37 = vadd.f32 %v901_v52, %v653_v50  ;;  %v903_v38 = vpop.f32.mrb[15].mxu1  ;;  %2003 = vmatprep.subr.bf16.mxu1 %v2002_v35 }
 0x1b8   : > { %v2225_v39 = vpop.eup %2224  ;;  %2244 = vtanh.f32 %v791_v36  ;;  %v904_v40 = vadd.f32 %v903_v38, %v653_v50  ;;  %2005 = vmatpush1.bf16.msra.mxu1 %v2004_v30  ;;  %v957_v10 = vpop.permute.xlu0 %956 }
 0x1b9   : > { %v2227_v41 = vpop.eup %2226  ;;  %2246 = vtanh.f32 %v902_v37  ;;  %v962_v18 = vpop.permute.xlu1 %961 }
 0x1ba   : > { %v2229_v42 = vpop.eup %2228  ;;  %2248 = vtanh.f32 %v904_v40  ;;  %v1992_v43 = vpack.c.bf16 %v2227_v41, %v2219_v32 }
 0x1bb   : > { %v2231_v45 = vpop.eup %2230  ;;  %v1990_v46 = vpack.c.bf16 %v2229_v42, %v2221_v51 }
 0x1bc   : > { %v2233_v47 = vpop.eup %2232  ;;  %v2008_v48 = vpack.c.bf16 %v2231_v45, %v2223_v53  ;;  %v967_v27 = vpop.permute.xlu0 %966 }
 0x1bd   : > { %v2235_v49 = vpop.eup %2234  ;;  %1991 = vmatprep.subr.bf16.mxu0 %v1990_v46  ;;  %v2006_v54 = vpack.c.bf16 %v2233_v47, %v2225_v39  ;;  %v972_v51 = vpop.permute.xlu1 %971 }
 0x1be   : > { %v2237_v55 = vpop.eup %2236  ;;  %1993 = vmatpush1.bf16.msra.mxu0 %v1992_v43 }
 0x1bf   : > { %v2239_v56 = vpop.eup %2238  ;;  %2007 = vmatprep.subr.bf16.mxu1 %v2006_v54 }
 0x1c0   : > { %v2241_v57 = vpop.eup %2240  ;;  %2009 = vmatpush1.bf16.msra.mxu1 %v2008_v48  ;;  %v977_v47 = vpop.permute.xlu0 %976 }
 0x1c1   : > { %v2243_v58 = vpop.eup %2242 }
 0x1c2   : > { %v2245_v59 = vpop.eup %2244  ;;  %v1996_v60 = vpack.c.bf16 %v2243_v58, %v2235_v49 }
 0x1c3   : > { %v2247_v61 = vpop.eup %2246  ;;  %v1994_v62 = vpack.c.bf16 %v2245_v59, %v2237_v55 }
 0x1c4   : > { %v2249_v63 = vpop.eup %2248  ;;  %v2012_v0 = vpack.c.bf16 %v2247_v61, %v2239_v56 }
 0x1c5   : > { %1995 = vmatprep.subr.bf16.mxu0 %v1994_v62  ;;  %v2010_v1 = vpack.c.bf16 %v2249_v63, %v2241_v57 }
 0x1c6   : > { %1997 = vmatpush1.bf16.msra.mxu0 %v1996_v60 }
 0x1c7   : > { %2011 = vmatprep.subr.bf16.mxu1 %v2010_v1 }
 0x1c8   : > { %2013 = vmatpush1.bf16.msra.mxu1 %v2012_v0 }
 0x1c9   : > { %1906 = vmatmul.mubr.msk.f32.vlgmr.msra.gmra.mrb[16].mxu0 %vm655_vm0, %v938_v2 }
 0x1ca   : > { %1088 = vmatprep.mubr.f32.mxu0 %v2459_v31 }
 0x1cb   : > { %1914 = vmatmul.mubr.msk.f32.vlgmr.msra.gmra.mrb[16].mxu1 %vm655_vm0, %v938_v2  ;;  %v982_v2 = vpop.permute.xlu1 %981 }
 0x1cc   : > { %1201 = vmatprep.mubr.f32.mxu1 %v2459_v31 }
 0x1cd   : > { %1907 = vmatmul.mubr.msk.f32.gmra.mrb[18].mxu0 %vm655_vm0, %v939_v3 }
 0x1ce   : > { %1094 = vmatprep.mubr.f32.mxu0 %v2459_v31 }
 0x1cf   : > { %1915 = vmatmul.mubr.msk.f32.gmra.mrb[18].mxu1 %vm655_vm0, %v939_v3 }
 0x1d0   : > { %1207 = vmatprep.mubr.f32.mxu1 %v2459_v31 }
 0x1d1   : > { %1908 = vmatmul.mubr.msk.f32.gmra.mrb[20].mxu0 %vm655_vm0, %v940_v4 }
 0x1d2   : > { %1100 = vmatprep.mubr.f32.mxu0 %v2459_v31 }
 0x1d3   : > { %1916 = vmatmul.mubr.msk.f32.gmra.mrb[20].mxu1 %vm655_vm0, %v940_v4 }
 0x1d4   : > { %1213 = vmatprep.mubr.f32.mxu1 %v2459_v31 }
 0x1d5   : > { %1909 = vmatmul.mubr.msk.f32.gmra.mrb[22].mxu0 %vm655_vm0, %v941_v5 }
 0x1d6   : > { %1106 = vmatprep.mubr.f32.mxu0 %v2459_v31 }
 0x1d7   : > { %1917 = vmatmul.mubr.msk.f32.gmra.mrb[22].mxu1 %vm655_vm0, %v941_v5 }
 0x1d8   : > { %1219 = vmatprep.mubr.f32.mxu1 %v2459_v31 }
 0x1d9   : > { %1910 = vmatmul.mubr.msk.f32.gmra.mrb[24].mxu0 %vm655_vm0, %v942_v6 }
 0x1da   : > { %1112 = vmatprep.mubr.f32.mxu0 %v2459_v31 }
 0x1db   : > { %1918 = vmatmul.mubr.msk.f32.gmra.mrb[24].mxu1 %vm655_vm0, %v942_v6 }
 0x1dc   : > { %1225 = vmatprep.mubr.f32.mxu1 %v2459_v31 }
 0x1dd   : > { %1911 = vmatmul.mubr.msk.f32.gmra.mrb[26].mxu0 %vm655_vm0, %v943_v7 }
 0x1de   : > { %1118 = vmatprep.mubr.f32.mxu0 %v2459_v31 }
 0x1df   : > { %1919 = vmatmul.mubr.msk.f32.gmra.mrb[26].mxu1 %vm655_vm0, %v943_v7 }
 0x1e0   : > { %1231 = vmatprep.mubr.f32.mxu1 %v2459_v31 }
 0x1e1   : > { %1912 = vmatmul.mubr.msk.f32.gmra.mrb[28].mxu0 %vm655_vm0, %v944_v8 }
 0x1e2   : > { %1124 = vmatprep.mubr.f32.mxu0 %v2459_v31 }
 0x1e3   : > { %1920 = vmatmul.mubr.msk.f32.gmra.mrb[28].mxu1 %vm655_vm0, %v944_v8 }
 0x1e4   : > { %1237 = vmatprep.mubr.f32.mxu1 %v2459_v31 }
 0x1e5   : > { %1913 = vmatmul.mubr.msk.f32.gmra.mrb[30].mxu0 %vm655_vm0, %v945_v9 }
 0x1e6   : > { %1420 = vmatprep.mubr.f32.mxu0 %v2459_v31 }
 0x1e7   : > { %1921 = vmatmul.mubr.msk.f32.gmra.mrb[30].mxu1 %vm655_vm0, %v945_v9 }
 0x1e8   : > { %1533 = vmatprep.mubr.f32.mxu1 %v2459_v31 }
 0x29c   : > { %v1084_v11 = vpop.f32.mrb[16].mxu0 }
 0x29d   : > { %v1085_v12 = vadd.f32 %v1084_v11, %v957_v10  ;;  %v1086_v13 = vpop.f32.mrb[17].mxu0 }
 0x29e   : > { %v1197_v14 = vpop.f32.mrb[16].mxu1  ;;  %v1087_v15 = vadd.f32 %v1086_v13, %v957_v10 }
 0x29f   : > { %2250 = vtanh.f32 %v1085_v12  ;;  %v1198_v16 = vadd.f32 %v1197_v14, %v957_v10  ;;  %v1199_v17 = vpop.f32.mrb[17].mxu1 }
 0x2a0   : > { %2252 = vtanh.f32 %v1087_v15  ;;  %v1200_v19 = vadd.f32 %v1199_v17, %v957_v10  ;;  %v1090_v20 = vpop.f32.mrb[18].mxu0  ;;  %v987_v17 = vpop.permute.xlu0 %986 }
 0x2a1   : > { %2254 = vtanh.f32 %v1198_v16  ;;  %v1091_v21 = vadd.f32 %v1090_v20, %v962_v18  ;;  %v1092_v22 = vpop.f32.mrb[19].mxu0 }
 0x2a2   : > { %2256 = vtanh.f32 %v1200_v19  ;;  %v1203_v23 = vpop.f32.mrb[18].mxu1  ;;  %v1093_v24 = vadd.f32 %v1092_v22, %v962_v18 }
 0x2a3   : > { %2258 = vtanh.f32 %v1091_v21  ;;  %v1204_v25 = vadd.f32 %v1203_v23, %v962_v18  ;;  %v1205_v26 = vpop.f32.mrb[19].mxu1 }
 0x2a4   : > { %2260 = vtanh.f32 %v1093_v24  ;;  %v1206_v50 = vadd.f32 %v1205_v26, %v962_v18  ;;  %v1096_v28 = vpop.f32.mrb[20].mxu0 }
 0x2a5   : > { %2262 = vtanh.f32 %v1204_v25  ;;  %v1097_v29 = vadd.f32 %v1096_v28, %v967_v27  ;;  %v1098_v30 = vpop.f32.mrb[21].mxu0 }
 0x2a6   : > { %2264 = vtanh.f32 %v1206_v50  ;;  %v1209_v32 = vpop.f32.mrb[20].mxu1  ;;  %v1099_v33 = vadd.f32 %v1098_v30, %v967_v27 }
 0x2a7   : > { %2266 = vtanh.f32 %v1097_v29  ;;  %v1210_v34 = vadd.f32 %v1209_v32, %v967_v27  ;;  %v1211_v35 = vpop.f32.mrb[21].mxu1  ;;  %v992_v32 = vpop.permute.xlu1 %991 }
 0x2a8   : > { %2268 = vtanh.f32 %v1099_v33  ;;  %v1212_v52 = vadd.f32 %v1211_v35, %v967_v27  ;;  %v1102_v36 = vpop.f32.mrb[22].mxu0 }
 0x2a9   : > { %v2251_v53 = vpop.eup %2250  ;;  %2270 = vtanh.f32 %v1210_v34  ;;  %v1103_v37 = vadd.f32 %v1102_v36, %v972_v51  ;;  %v1104_v38 = vpop.f32.mrb[23].mxu0 }
 0x2aa   : > { %v2253_v39 = vpop.eup %2252  ;;  %2272 = vtanh.f32 %v1212_v52  ;;  %v1215_v40 = vpop.f32.mrb[22].mxu1  ;;  %v1105_v41 = vadd.f32 %v1104_v38, %v972_v51 }
 0x2ab   : > { %v2255_v42 = vpop.eup %2254  ;;  %2274 = vtanh.f32 %v1103_v37  ;;  %v1216_v43 = vadd.f32 %v1215_v40, %v972_v51  ;;  %v1217_v45 = vpop.f32.mrb[23].mxu1 }
 0x2ac   : > { %v2257_v46 = vpop.eup %2256  ;;  %2276 = vtanh.f32 %v1105_v41  ;;  %v1218_v48 = vadd.f32 %v1217_v45, %v972_v51  ;;  %v1108_v49 = vpop.f32.mrb[24].mxu0 }
 0x2ad   : > { %v2259_v54 = vpop.eup %2258  ;;  %2278 = vtanh.f32 %v1216_v43  ;;  %v1109_v55 = vadd.f32 %v1108_v49, %v977_v47  ;;  %v1110_v56 = vpop.f32.mrb[25].mxu0 }
 0x2ae   : > { %v2261_v57 = vpop.eup %2260  ;;  %2280 = vtanh.f32 %v1218_v48  ;;  %v1221_v58 = vpop.f32.mrb[24].mxu1  ;;  %v1111_v59 = vadd.f32 %v1110_v56, %v977_v47  ;;  %v2016_v60 = vpack.c.bf16 %v2259_v54, %v2251_v53 }
 0x2af   : > { %v2263_v61 = vpop.eup %2262  ;;  %2282 = vtanh.f32 %v1109_v55  ;;  %v1222_v62 = vadd.f32 %v1221_v58, %v977_v47  ;;  %v1223_v63 = vpop.f32.mrb[25].mxu1  ;;  %v2014_v0 = vpack.c.bf16 %v2261_v57, %v2253_v39 }
 0x2b0   : > { %v2265_v1 = vpop.eup %2264  ;;  %2284 = vtanh.f32 %v1111_v59  ;;  %v1224_v3 = vadd.f32 %v1223_v63, %v977_v47  ;;  %v1114_v4 = vpop.f32.mrb[26].mxu0  ;;  %v2032_v5 = vpack.c.bf16 %v2263_v61, %v2255_v42 }
 0x2b1   : > { %v2267_v6 = vpop.eup %2266  ;;  %2286 = vtanh.f32 %v1222_v62  ;;  %v1115_v7 = vadd.f32 %v1114_v4, %v982_v2  ;;  %v1116_v8 = vpop.f32.mrb[27].mxu0  ;;  %2015 = vmatprep.subr.bf16.mxu0 %v2014_v0  ;;  %v2030_v9 = vpack.c.bf16 %v2265_v1, %v2257_v46 }
 0x2b2   : > { %v2269_v10 = vpop.eup %2268  ;;  %2288 = vtanh.f32 %v1224_v3  ;;  %v1227_v11 = vpop.f32.mrb[26].mxu1  ;;  %v1117_v12 = vadd.f32 %v1116_v8, %v982_v2  ;;  %2017 = vmatpush1.bf16.msra.mxu0 %v2016_v60  ;;  %v1278_v8 = vld [vmem:[%s2973_s7 + $0x10] sm:$0xff] }
 0x2b3   : > { %v2271_v13 = vpop.eup %2270  ;;  %2290 = vtanh.f32 %v1115_v7  ;;  %v1228_v14 = vadd.f32 %v1227_v11, %v982_v2  ;;  %v1229_v15 = vpop.f32.mrb[27].mxu1  ;;  %2031 = vmatprep.subr.bf16.mxu1 %v2030_v9  ;;  %v1277_v7 = vld [vmem:[%s2973_s7 + $0x8] sm:$0xff]  ;;  %v1279_v9 = vld [vmem:[%s2973_s7 + $0x18] sm:$0xff] }
 0x2b4   : > { %v2273_v16 = vpop.eup %2272  ;;  %2292 = vtanh.f32 %v1117_v12  ;;  %v1230_v18 = vadd.f32 %v1229_v15, %v982_v2  ;;  %2033 = vmatpush1.bf16.msra.mxu1 %v2032_v5  ;;  %v1120_v19 = vpop.f32.mrb[28].mxu0  ;;  %v1281_v11 = vld [vmem:[%s2973_s7 + $0x28] sm:$0xff]  ;;  %v1282_v12 = vld [vmem:[%s2973_s7 + $0x30] sm:$0xff] }
 0x2b5   : > { %v2275_v20 = vpop.eup %2274  ;;  %2294 = vtanh.f32 %v1228_v14  ;;  %v1121_v21 = vadd.f32 %v1120_v19, %v987_v17  ;;  %v1122_v22 = vpop.f32.mrb[29].mxu0 }
 0x2b6   : > { %v2277_v23 = vpop.eup %2276  ;;  %2296 = vtanh.f32 %v1230_v18  ;;  %v1233_v24 = vpop.f32.mrb[28].mxu1  ;;  %v1123_v25 = vadd.f32 %v1122_v22, %v987_v17  ;;  %v2020_v26 = vpack.c.bf16 %v2275_v20, %v2267_v6  ;;  %v1276_v6 = vld [vmem:[%s2973_s7] sm:$0xff] }
 0x2b7   : > { %v2279_v27 = vpop.eup %2278  ;;  %2298 = vtanh.f32 %v1121_v21  ;;  %v1234_v50 = vadd.f32 %v1233_v24, %v987_v17  ;;  %v1235_v28 = vpop.f32.mrb[29].mxu1  ;;  %v2018_v29 = vpack.c.bf16 %v2277_v23, %v2269_v10  ;;  %v1280_v10 = vld [vmem:[%s2973_s7 + $0x20] sm:$0xff] }
 0x2b8   : > { %v2281_v30 = vpop.eup %2280  ;;  %2300 = vtanh.f32 %v1123_v25  ;;  %v1236_v33 = vadd.f32 %v1235_v28, %v987_v17  ;;  %v1126_v34 = vpop.f32.mrb[30].mxu0  ;;  %v2036_v35 = vpack.c.bf16 %v2279_v27, %v2271_v13  ;;  %v1283_v13 = vld [vmem:[%s2973_s7 + $0x38] sm:$0xff] }
 0x2b9   : > { %v2283_v51 = vpop.eup %2282  ;;  %2302 = vtanh.f32 %v1234_v50  ;;  %v1127_v52 = vadd.f32 %v1126_v34, %v992_v32  ;;  %v1128_v36 = vpop.f32.mrb[31].mxu0  ;;  %2019 = vmatprep.subr.bf16.mxu0 %v2018_v29  ;;  %v2034_v53 = vpack.c.bf16 %v2281_v30, %v2273_v16 }
 0x2ba   : > { %v2285_v37 = vpop.eup %2284  ;;  %2304 = vtanh.f32 %v1236_v33  ;;  %v1239_v38 = vpop.f32.mrb[30].mxu1  ;;  %v1129_v39 = vadd.f32 %v1128_v36, %v992_v32  ;;  %2021 = vmatpush1.bf16.msra.mxu0 %v2020_v26 }
 0x2bb   : > { %v2287_v40 = vpop.eup %2286  ;;  %2306 = vtanh.f32 %v1127_v52  ;;  %v1240_v41 = vadd.f32 %v1239_v38, %v992_v32  ;;  %v1241_v42 = vpop.f32.mrb[31].mxu1  ;;  %2035 = vmatprep.subr.bf16.mxu1 %v2034_v53 }
 0x2bc   : > { %v2289_v43 = vpop.eup %2288  ;;  %2308 = vtanh.f32 %v1129_v39  ;;  %v1242_v45 = vadd.f32 %v1241_v42, %v992_v32  ;;  %2037 = vmatpush1.bf16.msra.mxu1 %v2036_v35  ;;  %v1295_v14 = vpop.permute.xlu0 %1294 }
 0x2bd   : > { %v2291_v46 = vpop.eup %2290  ;;  %2310 = vtanh.f32 %v1240_v41  ;;  %v1300_v22 = vpop.permute.xlu1 %1299 }
 0x2be   : > { %v2293_v47 = vpop.eup %2292  ;;  %2312 = vtanh.f32 %v1242_v45  ;;  %v2024_v48 = vpack.c.bf16 %v2291_v46, %v2283_v51 }
 0x2bf   : > { %v2295_v49 = vpop.eup %2294  ;;  %v2022_v54 = vpack.c.bf16 %v2293_v47, %v2285_v37 }
 0x2c0   : > { %v2297_v55 = vpop.eup %2296  ;;  %v2040_v56 = vpack.c.bf16 %v2295_v49, %v2287_v40  ;;  %v1305_v29 = vpop.permute.xlu0 %1304 }
 0x2c1   : > { %v2299_v57 = vpop.eup %2298  ;;  %2023 = vmatprep.subr.bf16.mxu0 %v2022_v54  ;;  %v2038_v58 = vpack.c.bf16 %v2297_v55, %v2289_v43  ;;  %v1310_v53 = vpop.permute.xlu1 %1309 }
 0x2c2   : > { %v2301_v59 = vpop.eup %2300  ;;  %2025 = vmatpush1.bf16.msra.mxu0 %v2024_v48 }
 0x2c3   : > { %v2303_v60 = vpop.eup %2302  ;;  %2039 = vmatprep.subr.bf16.mxu1 %v2038_v58 }
 0x2c4   : > { %v2305_v61 = vpop.eup %2304  ;;  %2041 = vmatpush1.bf16.msra.mxu1 %v2040_v56  ;;  %v1315_v54 = vpop.permute.xlu0 %1314 }
 0x2c5   : > { %v2307_v62 = vpop.eup %2306 }
 0x2c6   : > { %v2309_v63 = vpop.eup %2308  ;;  %v2028_v0 = vpack.c.bf16 %v2307_v62, %v2299_v57 }
 0x2c7   : > { %v2311_v1 = vpop.eup %2310  ;;  %v2026_v2 = vpack.c.bf16 %v2309_v63, %v2301_v59 }
 0x2c8   : > { %v2313_v3 = vpop.eup %2312  ;;  %v2044_v4 = vpack.c.bf16 %v2311_v1, %v2303_v60 }
 0x2c9   : > { %2027 = vmatprep.subr.bf16.mxu0 %v2026_v2  ;;  %v2042_v5 = vpack.c.bf16 %v2313_v3, %v2305_v61 }
 0x2ca   : > { %2029 = vmatpush1.bf16.msra.mxu0 %v2028_v0 }
 0x2cb   : > { %2043 = vmatprep.subr.bf16.mxu1 %v2042_v5  ;;  %v1320_v5 = vpop.permute.xlu1 %1319 }
 0x2cc   : > { %2045 = vmatpush1.bf16.msra.mxu1 %v2044_v4 }
 0x2cd   : > { %1922 = vmatmul.mubr.msk.f32.vlgmr.msra.gmra.mrb[32].mxu0 %vm655_vm0, %v1276_v6 }
 0x2ce   : > { %1426 = vmatprep.mubr.f32.mxu0 %v2459_v31 }
 0x2cf   : > { %1930 = vmatmul.mubr.msk.f32.vlgmr.msra.gmra.mrb[32].mxu1 %vm655_vm0, %v1276_v6 }
 0x2d0   : > { %1539 = vmatprep.mubr.f32.mxu1 %v2459_v31 }
 0x2d1   : > { %1923 = vmatmul.mubr.msk.f32.gmra.mrb[34].mxu0 %vm655_vm0, %v1277_v7 }
 0x2d2   : > { %1432 = vmatprep.mubr.f32.mxu0 %v2459_v31 }
 0x2d3   : > { %1931 = vmatmul.mubr.msk.f32.gmra.mrb[34].mxu1 %vm655_vm0, %v1277_v7 }
 0x2d4   : > { %1545 = vmatprep.mubr.f32.mxu1 %v2459_v31 }
 0x2d5   : > { %1924 = vmatmul.mubr.msk.f32.gmra.mrb[36].mxu0 %vm655_vm0, %v1278_v8 }
 0x2d6   : > { %1438 = vmatprep.mubr.f32.mxu0 %v2459_v31 }
 0x2d7   : > { %1932 = vmatmul.mubr.msk.f32.gmra.mrb[36].mxu1 %vm655_vm0, %v1278_v8 }
 0x2d8   : > { %1551 = vmatprep.mubr.f32.mxu1 %v2459_v31 }
 0x2d9   : > { %1925 = vmatmul.mubr.msk.f32.gmra.mrb[38].mxu0 %vm655_vm0, %v1279_v9 }
 0x2da   : > { %1444 = vmatprep.mubr.f32.mxu0 %v2459_v31 }
 0x2db   : > { %1933 = vmatmul.mubr.msk.f32.gmra.mrb[38].mxu1 %vm655_vm0, %v1279_v9 }
 0x2dc   : > { %1557 = vmatprep.mubr.f32.mxu1 %v2459_v31 }
 0x2dd   : > { %1926 = vmatmul.mubr.msk.f32.gmra.mrb[40].mxu0 %vm655_vm0, %v1280_v10 }
 0x2de   : > { %1450 = vmatprep.mubr.f32.mxu0 %v2459_v31 }
 0x2df   : > { %1934 = vmatmul.mubr.msk.f32.gmra.mrb[40].mxu1 %vm655_vm0, %v1280_v10 }
 0x2e0   : > { %1563 = vmatprep.mubr.f32.mxu1 %v2459_v31 }
 0x2e1   : > { %1927 = vmatmul.mubr.msk.f32.gmra.mrb[42].mxu0 %vm655_vm0, %v1281_v11 }
 0x2e2   : > { %1456 = vmatprep.mubr.f32.mxu0 %v2459_v31 }
 0x2e3   : > { %1935 = vmatmul.mubr.msk.f32.gmra.mrb[42].mxu1 %vm655_vm0, %v1281_v11 }
 0x2e4   : > { %1569 = vmatprep.mubr.f32.mxu1 %v2459_v31 }
 0x2e5   : > { %1928 = vmatmul.mubr.msk.f32.gmra.mrb[44].mxu0 %vm655_vm0, %v1282_v12 }
 0x2e6   : > { %1462 = vmatprep.mubr.f32.mxu0 %v2459_v31 }
 0x2e7   : > { %1936 = vmatmul.mubr.msk.f32.gmra.mrb[44].mxu1 %vm655_vm0, %v1282_v12 }
 0x2e8   : > { %1575 = vmatprep.mubr.f32.mxu1 %v2459_v31 }
 0x2e9   : > { %1929 = vmatmul.mubr.msk.f32.gmra.mrb[46].mxu0 %vm655_vm0, %v1283_v13 }
 0x2ea   : > { %1688 = vmatprep.mubr.f32.mxu0 %v2459_v31 }
 0x2eb   : > { %1937 = vmatmul.mubr.msk.f32.gmra.mrb[46].mxu1 %vm655_vm0, %v1283_v13 }
 0x2ec   : > { %1759 = vmatprep.mubr.f32.mxu1 %v2459_v31 }
 0x3a0   : > { %v1422_v15 = vpop.f32.mrb[32].mxu0 }
 0x3a1   : > { %v1423_v16 = vadd.f32 %v1422_v15, %v1295_v14  ;;  %v1424_v17 = vpop.f32.mrb[33].mxu0 }
 0x3a2   : > { %v1535_v18 = vpop.f32.mrb[32].mxu1  ;;  %v1425_v19 = vadd.f32 %v1424_v17, %v1295_v14 }
 0x3a3   : > { %2314 = vtanh.f32 %v1423_v16  ;;  %v1536_v20 = vadd.f32 %v1535_v18, %v1295_v14  ;;  %v1537_v21 = vpop.f32.mrb[33].mxu1 }
 0x3a4   : > { %2316 = vtanh.f32 %v1425_v19  ;;  %v1538_v23 = vadd.f32 %v1537_v21, %v1295_v14  ;;  %v1428_v24 = vpop.f32.mrb[34].mxu0 }
 0x3a5   : > { %2318 = vtanh.f32 %v1536_v20  ;;  %v1429_v25 = vadd.f32 %v1428_v24, %v1300_v22  ;;  %v1430_v26 = vpop.f32.mrb[35].mxu0  ;;  %v1325_v20 = vpop.permute.xlu0 %1324 }
 0x3a6   : > { %2320 = vtanh.f32 %v1538_v23  ;;  %v1541_v27 = vpop.f32.mrb[34].mxu1  ;;  %v1431_v50 = vadd.f32 %v1430_v26, %v1300_v22 }
 0x3a7   : > { %2322 = vtanh.f32 %v1429_v25  ;;  %v1542_v31 = vadd.f32 %v1541_v27, %v1300_v22  ;;  %v1543_v28 = vpop.f32.mrb[35].mxu1 }
 0x3a8   : > { %2324 = vtanh.f32 %v1431_v50  ;;  %v1544_v30 = vadd.f32 %v1543_v28, %v1300_v22  ;;  %v1434_v32 = vpop.f32.mrb[36].mxu0 }
 0x3a9   : > { %2326 = vtanh.f32 %v1542_v31  ;;  %v1435_v33 = vadd.f32 %v1434_v32, %v1305_v29  ;;  %v1436_v34 = vpop.f32.mrb[37].mxu0 }
 0x3aa   : > { %2328 = vtanh.f32 %v1544_v30  ;;  %v1547_v35 = vpop.f32.mrb[36].mxu1  ;;  %v1437_v51 = vadd.f32 %v1436_v34, %v1305_v29  ;;  %v1330_v34 = vpop.permute.xlu1 %1329 }
 0x3ab   : > { %2330 = vtanh.f32 %v1435_v33  ;;  %v1548_v52 = vadd.f32 %v1547_v35, %v1305_v29  ;;  %v1549_v36 = vpop.f32.mrb[37].mxu1 }
 0x3ac   : > { %2332 = vtanh.f32 %v1437_v51  ;;  %v1550_v37 = vadd.f32 %v1549_v36, %v1305_v29  ;;  %v1440_v38 = vpop.f32.mrb[38].mxu0 }
 0x3ad   : > { %v2315_v39 = vpop.eup %2314  ;;  %2334 = vtanh.f32 %v1548_v52  ;;  %v1441_v40 = vadd.f32 %v1440_v38, %v1310_v53  ;;  %v1442_v41 = vpop.f32.mrb[39].mxu0 }
 0x3ae   : > { %v2317_v42 = vpop.eup %2316  ;;  %2336 = vtanh.f32 %v1550_v37  ;;  %v1553_v43 = vpop.f32.mrb[38].mxu1  ;;  %v1443_v45 = vadd.f32 %v1442_v41, %v1310_v53 }
 0x3af   : > { %v2319_v46 = vpop.eup %2318  ;;  %2338 = vtanh.f32 %v1441_v40  ;;  %v1554_v47 = vadd.f32 %v1553_v43, %v1310_v53  ;;  %v1555_v48 = vpop.f32.mrb[39].mxu1 }
 0x3b0   : > { %v2321_v49 = vpop.eup %2320  ;;  %2340 = vtanh.f32 %v1443_v45  ;;  %v1556_v55 = vadd.f32 %v1555_v48, %v1310_v53  ;;  %v1446_v56 = vpop.f32.mrb[40].mxu0 }
 0x3b1   : > { %v2323_v57 = vpop.eup %2322  ;;  %2342 = vtanh.f32 %v1554_v47  ;;  %v1447_v58 = vadd.f32 %v1446_v56, %v1315_v54  ;;  %v1448_v59 = vpop.f32.mrb[41].mxu0 }
 0x3b2   : > { %v2325_v60 = vpop.eup %2324  ;;  %2344 = vtanh.f32 %v1556_v55  ;;  %v1559_v61 = vpop.f32.mrb[40].mxu1  ;;  %v1449_v62 = vadd.f32 %v1448_v59, %v1315_v54  ;;  %v2048_v63 = vpack.c.bf16 %v2323_v57, %v2315_v39 }
 0x3b3   : > { %v2327_v0 = vpop.eup %2326  ;;  %2346 = vtanh.f32 %v1447_v58  ;;  %v1560_v1 = vadd.f32 %v1559_v61, %v1315_v54  ;;  %v1561_v2 = vpop.f32.mrb[41].mxu1  ;;  %v2046_v3 = vpack.c.bf16 %v2325_v60, %v2317_v42 }
 0x3b4   : > { %v2329_v4 = vpop.eup %2328  ;;  %2348 = vtanh.f32 %v1449_v62  ;;  %v1562_v6 = vadd.f32 %v1561_v2, %v1315_v54  ;;  %v1452_v7 = vpop.f32.mrb[42].mxu0  ;;  %v2064_v8 = vpack.c.bf16 %v2327_v0, %v2319_v46 }
 0x3b5   : > { %v2331_v9 = vpop.eup %2330  ;;  %2350 = vtanh.f32 %v1560_v1  ;;  %v1453_v10 = vadd.f32 %v1452_v7, %v1320_v5  ;;  %v1454_v11 = vpop.f32.mrb[43].mxu0  ;;  %2047 = vmatprep.subr.bf16.mxu0 %v2046_v3  ;;  %v2062_v12 = vpack.c.bf16 %v2329_v4, %v2321_v49 }
 0x3b6   : > { %v2333_v13 = vpop.eup %2332  ;;  %2352 = vtanh.f32 %v1562_v6  ;;  %v1565_v14 = vpop.f32.mrb[42].mxu1  ;;  %v1455_v15 = vadd.f32 %v1454_v11, %v1320_v5  ;;  %2049 = vmatpush1.bf16.msra.mxu0 %v2048_v63 }
 0x3b7   : > { %v2335_v16 = vpop.eup %2334  ;;  %2354 = vtanh.f32 %v1453_v10  ;;  %v1566_v17 = vadd.f32 %v1565_v14, %v1320_v5  ;;  %v1567_v18 = vpop.f32.mrb[43].mxu1  ;;  %2063 = vmatprep.subr.bf16.mxu1 %v2062_v12 }
 0x3b8   : > { %v2337_v19 = vpop.eup %2336  ;;  %2356 = vtanh.f32 %v1455_v15  ;;  %v1568_v21 = vadd.f32 %v1567_v18, %v1320_v5  ;;  %2065 = vmatpush1.bf16.msra.mxu1 %v2064_v8  ;;  %v1458_v22 = vpop.f32.mrb[44].mxu0  ;;  %v1614_v8 = vld [vmem:[%s2975_s9] sm:$0x3] }
 0x3b9   : > { %v2339_v23 = vpop.eup %2338  ;;  %2358 = vtanh.f32 %v1566_v17  ;;  %v1459_v24 = vadd.f32 %v1458_v22, %v1325_v20  ;;  %v1460_v25 = vpop.f32.mrb[45].mxu0 }
 0x3ba   : > { %v2341_v26 = vpop.eup %2340  ;;  %2360 = vtanh.f32 %v1568_v21  ;;  %v1571_v27 = vpop.f32.mrb[44].mxu1  ;;  %v1461_v50 = vadd.f32 %v1460_v25, %v1325_v20  ;;  %v2052_v31 = vpack.c.bf16 %v2339_v23, %v2331_v9 }
 0x3bb   : > { %v2343_v28 = vpop.eup %2342  ;;  %2362 = vtanh.f32 %v1459_v24  ;;  %v1572_v29 = vadd.f32 %v1571_v27, %v1325_v20  ;;  %v1573_v30 = vpop.f32.mrb[45].mxu1  ;;  %v2050_v32 = vpack.c.bf16 %v2341_v26, %v2333_v13 }
 0x3bc   : > { %v2345_v33 = vpop.eup %2344  ;;  %2364 = vtanh.f32 %v1461_v50  ;;  %v1574_v35 = vadd.f32 %v1573_v30, %v1325_v20  ;;  %v1464_v51 = vpop.f32.mrb[46].mxu0  ;;  %v2068_v52 = vpack.c.bf16 %v2343_v28, %v2335_v16  ;;  %v2460_v28 = vmov 1983009808  }
 0x3bd   : > { %v2347_v36 = vpop.eup %2346  ;;  %2366 = vtanh.f32 %v1572_v29  ;;  %v1465_v53 = vadd.f32 %v1464_v51, %v1330_v34  ;;  %v1466_v37 = vpop.f32.mrb[47].mxu0  ;;  %2051 = vmatprep.subr.bf16.mxu0 %v2050_v32  ;;  %v2066_v38 = vpack.c.bf16 %v2345_v33, %v2337_v19  ;;  %v1797_v29 = vunpack.c.l.s4 %v2460_v28 }
 0x3be   : > { %v2349_v39 = vpop.eup %2348  ;;  %2368 = vtanh.f32 %v1574_v35  ;;  %v1577_v40 = vpop.f32.mrb[46].mxu1  ;;  %v1467_v41 = vadd.f32 %v1466_v37, %v1330_v34  ;;  %2053 = vmatpush1.bf16.msra.mxu0 %v2052_v31 }
 0x3bf   : > { %v2351_v42 = vpop.eup %2350  ;;  %2370 = vtanh.f32 %v1465_v53  ;;  %v1578_v43 = vadd.f32 %v1577_v40, %v1330_v34  ;;  %v1579_v45 = vpop.f32.mrb[47].mxu1  ;;  %2067 = vmatprep.subr.bf16.mxu1 %v2066_v38  ;;  %v1798_v30 = vunpack.c.0.s8 %v1797_v29 }
 0x3c0   : > { %v2353_v46 = vpop.eup %2352  ;;  %2372 = vtanh.f32 %v1467_v41  ;;  %v1580_v47 = vadd.f32 %v1579_v45, %v1330_v34  ;;  %2069 = vmatpush1.bf16.msra.mxu1 %v2068_v52  ;;  %v1619_v9 = vpop.permute.xlu0 %1618 }
 0x3c1   : > { %v2355_v48 = vpop.eup %2354  ;;  %2374 = vtanh.f32 %v1578_v43  ;;  %v1801_v33 = vsub.s32 %v1798_v30, %v2696_v44 }
 0x3c2   : > { %v2357_v49 = vpop.eup %2356  ;;  %2376 = vtanh.f32 %v1580_v47  ;;  %v2056_v54 = vpack.c.bf16 %v2355_v48, %v2347_v36 }
 0x3c3   : > { %v2359_v55 = vpop.eup %2358  ;;  %v2054_v56 = vpack.c.bf16 %v2357_v49, %v2349_v39 }
 0x3c4   : > { %v2361_v57 = vpop.eup %2360  ;;  %v2072_v58 = vpack.c.bf16 %v2359_v55, %v2351_v42 }
 0x3c5   : > { %v2363_v59 = vpop.eup %2362  ;;  %2055 = vmatprep.subr.bf16.mxu0 %v2054_v56  ;;  %v2070_v60 = vpack.c.bf16 %v2361_v57, %v2353_v46 }
 0x3c6   : > { %v2365_v61 = vpop.eup %2364  ;;  %2057 = vmatpush1.bf16.msra.mxu0 %v2056_v54 }
 0x3c7   : > { %v2367_v62 = vpop.eup %2366  ;;  %2071 = vmatprep.subr.bf16.mxu1 %v2070_v60 }
 0x3c8   : > { %v2369_v63 = vpop.eup %2368  ;;  %2073 = vmatpush1.bf16.msra.mxu1 %v2072_v58 }
 0x3c9   : > { %v2371_v0 = vpop.eup %2370 }
 0x3ca   : > { %v2373_v1 = vpop.eup %2372  ;;  %v2060_v2 = vpack.c.bf16 %v2371_v0, %v2363_v59 }
 0x3cb   : > { %v2375_v3 = vpop.eup %2374  ;;  %v2058_v4 = vpack.c.bf16 %v2373_v1, %v2365_v61 }
 0x3cc   : > { %v2377_v5 = vpop.eup %2376  ;;  %v2076_v6 = vpack.c.bf16 %v2375_v3, %v2367_v62 }
 0x3cd   : > { %2059 = vmatprep.subr.bf16.mxu0 %v2058_v4  ;;  %v2074_v7 = vpack.c.bf16 %v2377_v5, %v2369_v63 }
 0x3ce   : > { %2061 = vmatpush1.bf16.msra.mxu0 %v2060_v2 }
 0x3cf   : > { %2075 = vmatprep.subr.bf16.mxu1 %v2074_v7 }
 0x3d0   : > { %2077 = vmatpush1.bf16.msra.mxu1 %v2076_v6 }
 0x3d1   : > { %1938 = vmatmul.mubr.msk.f32.vlgmr.msra.gmra.mrb[48].mxu0 %vm655_vm0, %v1614_v8 }
 0x3d3   : > { %1939 = vmatmul.mubr.msk.f32.vlgmr.msra.gmra.mrb[48].mxu1 %vm655_vm0, %v1614_v8 }
 0x4a4   : > { %v1690_v10 = vpop.f32.mrb[48].mxu0 }
 0x4a5   : > { %v1691_v11 = vadd.f32 %v1690_v10, %v1619_v9  ;;  %v1692_v12 = vpop.f32.mrb[49].mxu0 }
 0x4a6   : > { %v1761_v13 = vpop.f32.mrb[48].mxu1  ;;  %v1693_v14 = vadd.f32 %v1692_v12, %v1619_v9 }
 0x4a7   : > { %v1940_v15 = vmul.f32 -1.442695, %v1691_v11  ;;  %v1762_v16 = vadd.f32 %v1761_v13, %v1619_v9  ;;  %v1763_v17 = vpop.f32.mrb[49].mxu1 }
 0x4a8   : > { %v1941_v18 = vmul.f32 -1.442695, %v1693_v14  ;;  %v1764_v19 = vadd.f32 %v1763_v17, %v1619_v9 }
 0x4a9   : > { %2378 = vpow2.f32 %v1940_v15  ;;  %v1942_v20 = vmul.f32 -1.442695, %v1762_v16 }
 0x4aa   : > { %2380 = vpow2.f32 %v1941_v18  ;;  %v1943_v21 = vmul.f32 -1.442695, %v1764_v19 }
 0x4ab   : > { %2382 = vpow2.f32 %v1942_v20 }
 0x4ac   : > { %2384 = vpow2.f32 %v1943_v21 }
 0x4b3   : > { %v2379_v22 = vpop.eup %2378 }
 0x4b4   : > { %v2381_v23 = vpop.eup %2380  ;;  %v1778_v24 = vadd.f32 1.0, %v2379_v22 }
 0x4b5   : > { %v2383_v25 = vpop.eup %2382  ;;  %v1779_v26 = vadd.f32 1.0, %v2381_v23 }
 0x4b6   : > { %v2385_v27 = vpop.eup %2384  ;;  %2386 = vrcp.f32 %v1778_v24  ;;  %v1780_v50 = vadd.f32 1.0, %v2383_v25 }
 0x4b7   : > { %2388 = vrcp.f32 %v1779_v26  ;;  %v1781_v31 = vadd.f32 1.0, %v2385_v27 }
 0x4b8   : > { %2390 = vrcp.f32 %v1780_v50 }
 0x4b9   : > { %2392 = vrcp.f32 %v1781_v31 }
 0x4c0   : > { %v2387_v32 = vpop.eup %2386 }
 0x4c1   : > { %v2389_v34 = vpop.eup %2388 }
 0x4c2   : > { %v2391_v35 = vpop.eup %2390  ;;  %v1794_v51 = vcombine.low %v2387_v32, %v2389_v34 }
 0x4c3   : > { %v2393_v52 = vpop.eup %2392 }
 0x4c4   : > { %v1795_v36 = vcombine.low %v2391_v35, %v2393_v52  ;;  %v1802_v53 = vrot.slane %v1794_v51, %v1801_v33 }
 0x4c6   : > { %v1809_v37 = vrot.slane %v1795_v36, %v1801_v33 }
 0x4c8   : > { %v1810_v38 = vcombine.low %v1802_v53, %v1809_v37 }
 0x4ca   : > { %1812 = vst [vmem:[%s378_s25] sm:$0xff] %v1810_v38 }
 0x4cb   : > { %2407 = shalt.err (!%p2404_p3)
}
 0x4cc   : > { %s2408_s16 = scalar_lea.hbm %s2924_s13, 128  ;;  %s2412_s30 = scalar_lea.hbm %s2977_s11, 256 }
 0x4cd   : > { %p2409_p4 = scmp.ne.s32.totalorder %s2924_s13, %s2408_s16  ;;  %p2413_p9 = scmp.lt.u32.totalorder %s2924_s13, %s2977_s11 }
 0x4ce   : > { %p2414_p10 = scmp.lt.u32.totalorder %s2412_s30, %s2408_s16  ;;  %p2416_p12 = scmp.lt.u32.totalorder %s2408_s16, %s2924_s13 }
 0x4cf   : > { %p2410_p7 = pnand %p2409_p4, %p2560_p5 }
 0x4d0   : > { %p2415_p11 = por %p2414_p10, %p2413_p9 }
 0x4d1   : > { %p2411_p8 = pneg %p2410_p7 }
 0x4d2   : > { %p2417_p13 = por %p2416_p12, %p2415_p11 }
 0x4d4   : > { %p2418_p0 = pnand %p2417_p13, %p2411_p8 }
 0x4d6   : > { %2421 = shalt.err (!%p2418_p0)
}
 0x4d7   : > { %2078 = dma.vmem_to_hbm [thread:$0]  (%p2560_p5), %s2926_s29, 128, %s2924_s13, %s1814_s14  }
 0x4d8 PF: > { %p2084_p1 = scmp.ge.s32.totalorder %s2456_s20, 2  ;;  %s1840_s0 = sand.u32 1, %s2444_s17  }
 0x4d9   : > { %s1841_s15 = scalar_lea.sflag [#allocation3], %s1840_s0 }
 0x4da   : > { %p2081_p2 = pnand %p2084_p1, %p2564_p6 }
 0x4dc   : > { %2439 = dma.done.wait (!%p2081_p2), %s1841_s15, 128  }
 0x4dd   : > { %2441 = vsyncadd (!%p2081_p2), %s1841_s15, 4294967168  ;;  %p21_p3 = scmp.ge.s32.totalorder %s2547_s23, 4   ;;  %s2982_s17 = smov %s2448_s18 }
 0x4de   : > { %s2983_s18 = smov %s2452_s19  ;;  %s2984_s19 = smov %s2558_s26 }
 0x4df   : > { %s2985_s20 = smov %s2547_s23  ;;  %23 = sbr.rel (!%p21_p3) target bundleno = 5 (0x5), region = 99 }
 0x4e6   :  { %1846 = vsyncpa [#allocation3], 1 }
 0x4e7   :  { %1848 = vsyncpa [#allocation3 + $0x1], 1 }

</bundles_post_ra>
